<compile_context>
chip_gen: v6e
topology: v6e:2x2x1
jax: 0.10.0
libtpu: 0.0.40
codegen_flags: <defaults>
</compile_context>

<pallas_src>
import numpy as np
import jax
import jax.numpy as jnp
from jax.experimental import pallas as pl
from jax.experimental.pallas import tpu as pltpu

# ---------------- problem sizes (small, consistent with the module) ----------
B = 2
IN_CHANNELS = [4, 4, 8]            # [shallow, current, deep]
C0, C1, C2 = IN_CHANNELS
SC = sum(IN_CHANNELS)              # fused channel count = 16
H2, W2 = 16, 16                    # shallow spatial
H, W = H2 // 2, W2 // 2            # current spatial (8, 8)
HD, WD = 4, 4                      # deep spatial
PAD = 4                            # max "same" padding among the 4 multi-scale convs
WP = W2 + 2 * PAD                  # 24  padded width (per channel)
HP = H2 + 2 * PAD                  # 24  padded height
NDH = 2 * PAD + 1                  # 9   row taps
KB = C0 * WP                       # 96  contraction width per row tap
KTOT = NDH * KB                    # 864 full contraction width (one GEMM)
NSF = 4 * W2                       # 64  cols: four multi-scale maps at full res
NCOL = NSF + C0 * W                # 96  + downsample conv at stride-2 columns
BH = B * H                         # 16  output rows (b, ho)
BH2 = B * H2                       # 32  GEMM rows (b, h)


# ---------------- elementwise helpers (used both in-kernel and in reference) --
def _softplus(x):
    return jnp.where(x > 20.0, x, jnp.log(1.0 + jnp.exp(jnp.minimum(x, 20.0))))


def _mish(x):
    return x * jnp.tanh(_softplus(x))


def _sigmoid(x):
    return 1.0 / (1.0 + jnp.exp(-x))


# ---------------- the single fused kernel (one invocation, batch folded) ------
def _ssia_kernel(im_ref, wt_ref, cur_ref, dr_ref, dcm_ref,
                 bsp_ref, asp_ref, sev_ref, trep_ref,
                 ahb_ref, awb_ref, w1b_ref, w2b_ref,
                 u_ref, v_ref, scal_ref, out_ref):
    f32 = jnp.float32

    # -- Stage 1: all five shallow convs as ONE GEMM (32,864)@(864,96) + Mish --
    rm = _mish(jnp.dot(im_ref[...], wt_ref[...], preferred_element_type=f32))

    sf = rm[:, :NSF]               # (32, 64) four multi-scale maps, rows (b, h)
    dn = rm[:, NSF:NCOL]           # (32, 32) downsample-conv cols (co, wo)

    # -- spatial weight: factored 3x3 stride-2 conv + bias + sigmoid -----------
    t = jnp.dot(sf, bsp_ref[...], preferred_element_type=f32)               # (32, 24)
    swp = (jnp.dot(asp_ref[0:BH, :], t[:, 0:W], preferred_element_type=f32)
           + jnp.dot(asp_ref[BH:2 * BH, :], t[:, W:2 * W],
                     preferred_element_type=f32)
           + jnp.dot(asp_ref[2 * BH:3 * BH, :], t[:, 2 * W:3 * W],
                     preferred_element_type=f32))                           # (16, 8)
    sw2 = _sigmoid(swp + jnp.full((1, 1), scal_ref[2], f32))                # (16, 8)
    sw_g = jnp.dot(sw2, trep_ref[...], preferred_element_type=f32)          # (16, 128)

    # -- downsample conv: stride-2 row selection on the MXU --------------------
    down2 = jnp.dot(sev_ref[...], dn, preferred_element_type=f32)           # (16, 32)

    # -- bilinear align_corners upsample of deep (two block-diag matmuls) ------
    tdi = jnp.dot(dr_ref[...], awb_ref[...], preferred_element_type=f32)    # (8, 64)
    interp2 = jnp.dot(ahb_ref[...], tdi, preferred_element_type=f32)        # (16, 64)

    # -- channel attention (column form, batch block-diagonal weights) ---------
    avgv = jnp.mean(dcm_ref[...], axis=1, keepdims=True)                    # (16, 1)
    maxv = jnp.max(dcm_ref[...], axis=1, keepdims=True)                     # (16, 1)
    fw0 = jnp.full((1, 1), scal_ref[0], f32)                                # sig(fw[0])
    fw1 = jnp.full((1, 1), scal_ref[1], f32)                                # sig(fw[1])
    cfv = avgv * fw0 + maxv * fw1                                           # (16, 1)
    hv = _mish(jnp.dot(w1b_ref[...], cfv, preferred_element_type=f32))      # (16, 1)
    cwv = _sigmoid(jnp.dot(w2b_ref[...], hv, preferred_element_type=f32))   # (32, 1)
    cw_g = jnp.dot(u_ref[...], cwv * v_ref[...],
                   preferred_element_type=f32)                              # (16, 128)

    # -- fuse, gate, one unmasked lane-dense (16, 128) store -------------------
    fused2 = jnp.concatenate([down2, cur_ref[...], interp2], axis=1)        # (16, 128)
    out_ref[...] = fused2 * sw_g * cw_g


# ---------------- wrapper ------------------------------------------------------
def ssia_fuse(shallow, current, deep, prep):
    f32 = jnp.float32

    # layout-only input prep (wrapper side, tiny, XLA-fused):
    xpad = jnp.pad(shallow, ((0, 0), (0, 0), (PAD, PAD), (PAD, PAD)))
    xp = jnp.transpose(xpad, (0, 2, 1, 3)).reshape(B, HP, KB)               # (B,24,96)
    im2row = jnp.concatenate([xp[:, dh:dh + H2, :] for dh in range(NDH)],
                             axis=2).reshape(BH2, KTOT)                     # (32, 864)
    cur2 = jnp.transpose(current, (0, 2, 1, 3)).reshape(BH, C1 * W)         # (16, 32)
    deep_r = jnp.transpose(deep, (0, 2, 1, 3)).reshape(B * HD, C2 * WD)     # (8, 32)
    deep_cm = deep.reshape(B * C2, HD * WD)                                 # (16, 16)

    def vspec(shape):
        return pl.BlockSpec(shape, lambda i, _s=shape: (0,) * len(_s))

    out2 = pl.pallas_call(
        _ssia_kernel,
        grid=(1,),                         # batch folded into GEMM rows / lanes
        in_specs=[
            vspec((BH2, KTOT)),            # im2row of padded shallow
            vspec((KTOT, NCOL)),           # Toeplitz conv weights (all 5 convs)
            vspec((BH, C1 * W)),           # current, rows (b,h) x cols (c,w)
            vspec((B * HD, C2 * WD)),      # deep, (b,i) x (c,j)   for upsample
            vspec((B * C2, HD * WD)),      # deep, (b,c) x (i,j)   for attention
            vspec((NSF, 3 * W)),           # spatial conv column factor
            vspec((3 * BH, BH2)),          # spatial conv row-tap selectors
            vspec((BH, BH2)),              # stride-2 row selector (downsample)
            vspec((W, SC * W)),            # spatial-gate lane replication
            vspec((BH, B * HD)),           # bilinear row factor (block-diag)
            vspec((C2 * WD, C2 * W)),      # bilinear col factor (block-diag)
            vspec((B * C2, B * C2)),       # channel 1x1 conv #1 (block-diag)
            vspec((B * SC, B * C2)),       # channel 1x1 conv #2 (block-diag)
            vspec((BH, B * SC)),           # channel-gate expansion U
            vspec((B * SC, SC * W)),       # channel-gate expansion V
            pl.BlockSpec(memory_space=pltpu.MemorySpace.SMEM),  # [sig(fw0),sig(fw1),bsp]
        ],
        out_specs=pl.BlockSpec((BH, SC * W), lambda i: (0, 0)),
        out_shape=jax.ShapeDtypeStruct((BH, SC * W), f32),
    )(im2row, prep["w_toep"], cur2, deep_r, deep_cm,
      prep["b_sp"], prep["a_sp"], prep["s_even"], prep["t_rep"],
      prep["ah_blk"], prep["aw_blk"], prep["w1_blk"], prep["w2_blk"],
      prep["u_mat"], prep["v_mat"], prep["scal"])

    # (16,128) lane-dense slab -> NCHW (free layout op in the wrapper)
    return out2.reshape(B, H, SC, W).transpose(0, 2, 1, 3)


# ---------------- one-time host-side weight repacking --------------------------
def prepare_params(params):
    f32 = np.float32
    w3 = np.asarray(params["w3"], f32)
    w5 = np.asarray(params["w5"], f32)
    w7 = np.asarray(params["w7"], f32)
    w9 = np.asarray(params["w9"], f32)
    wd = np.asarray(params["wd"], f32)
    wsp = np.asarray(params["wsp"], f32)
    ah = np.asarray(params["ah"], f32)            # (H, HD)
    aw = np.asarray(params["aw"], f32)            # (W, WD)
    W1 = np.asarray(params["w1"], f32).reshape(C2, C2)
    W2m = np.asarray(params["w2"], f32).reshape(SC, C2)
    fw = np.asarray(params["fw"], f32)
    bsp = np.asarray(params["bsp"], f32)

    # 1) Row-tap Toeplitz weight: row = dh*KB + c*WP + padded_col, col = output.
    w_toep = np.zeros((KTOT, NCOL), f32)
    heads = [(w3, 3, 1, 1), (w5, 5, 1, 2), (w7, 3, 3, 3), (w9, 5, 2, 4)]
    for hd, (wgt, k, d, p) in enumerate(heads):   # stride-1, full 16x16 out
        for c in range(C0):
            for kh in range(k):
                dh = d * kh - p + PAD
                for kw in range(k):
                    for wo in range(W2):
                        j = wo + d * kw - p + PAD
                        w_toep[dh * KB + c * WP + j, hd * W2 + wo] += wgt[0, c, kh, kw]
    for co in range(C0):                          # downsample, stride-2 cols
        for c in range(C0):
            for kh in range(3):
                dh = kh - 1 + PAD
                for kw in range(3):
                    for wo in range(W):
                        j = 2 * wo + kw - 1 + PAD
                        w_toep[dh * KB + c * WP + j, NSF + co * W + wo] += wd[co, c, kh, kw]

    # 2) spatial_weight_conv (4->1, 3x3, stride 2, pad 1), two-sided factored.
    b_sp = np.zeros((NSF, 3 * W), f32)
    for c in range(4):
        for kh in range(3):
            for kw in range(3):
                for wo in range(W):
                    w_in = 2 * wo + kw - 1
                    if 0 <= w_in < W2:
                        b_sp[c * W2 + w_in, kh * W + wo] += wsp[0, c, kh, kw]
    a_sp = np.zeros((3 * BH, BH2), f32)           # row-tap selectors, batch block-diag
    for kh in range(3):
        for b in range(B):
            for ho in range(H):
                h_in = 2 * ho + kh - 1
                if 0 <= h_in < H2:
                    a_sp[kh * BH + b * H + ho, b * H2 + h_in] = 1.0

    # 3) even-row selector for the stride-2 downsample output rows.
    s_even = np.zeros((BH, BH2), f32)
    for b in range(B):
        for ho in range(H):
            s_even[b * H + ho, b * H2 + 2 * ho] = 1.0

    # 4) spatial-gate lane replication (W -> SC*W lanes).
    t_rep = np.zeros((W, SC * W), f32)
    for sc in range(SC):
        t_rep[:, sc * W:(sc + 1) * W] = np.eye(W, dtype=f32)

    # 5) bilinear align_corners upsample as block-diagonal factors.
    ah_blk = np.zeros((BH, B * HD), f32)
    aw_blk = np.zeros((C2 * WD, C2 * W), f32)
    for b in range(B):
        ah_blk[b * H:(b + 1) * H, b * HD:(b + 1) * HD] = ah
    for c in range(C2):
        aw_blk[c * WD:(c + 1) * WD, c * W:(c + 1) * W] = aw.T

    # 6) channel-attention 1x1 convs, batch block-diagonal (column form).
    w1_blk = np.zeros((B * C2, B * C2), f32)
    w2_blk = np.zeros((B * SC, B * C2), f32)
    for b in range(B):
        w1_blk[b * C2:(b + 1) * C2, b * C2:(b + 1) * C2] = W1
        w2_blk[b * SC:(b + 1) * SC, b * C2:(b + 1) * C2] = W2m

    # 7) channel-gate expansion:  cw_g = U @ (cwv * V)  ->  cw_g[(b,ho),(sc,wo)] = cwv[b,sc]
    u_mat = np.zeros((BH, B * SC), f32)
    v_mat = np.zeros((B * SC, SC * W), f32)
    for b in range(B):
        u_mat[b * H:(b + 1) * H, b * SC:(b + 1) * SC] = 1.0
        for sc in range(SC):
            v_mat[b * SC + sc, sc * W:(sc + 1) * W] = 1.0

    # 8) scalars: sigmoid(feature_weight) (folded host-side) and spatial-conv bias.
    scal = np.array([1.0 / (1.0 + np.exp(-fw[0])),
                     1.0 / (1.0 + np.exp(-fw[1])),
                     bsp[0]], f32)

    host = dict(w_toep=w_toep, b_sp=b_sp, a_sp=a_sp, s_even=s_even, t_rep=t_rep,
                ah_blk=ah_blk, aw_blk=aw_blk, w1_blk=w1_blk, w2_blk=w2_blk,
                u_mat=u_mat, v_mat=v_mat, scal=scal)
    return {k: jnp.asarray(v) for k, v in host.items()}


# ---------------- deterministic parameter init --------------------------------
def _interp_matrix(out_size, in_size):
    A = np.zeros((out_size, in_size), np.float32)
    if out_size == 1:
        A[0, 0] = 1.0
        return A
    scale = (in_size - 1) / (out_size - 1)        # align_corners=True
    for i in range(out_size):
        src = i * scale
        lo = min(int(np.floor(src)), in_size - 1)
        hi = min(lo + 1, in_size - 1)
        frac = src - lo
        A[i, lo] += 1.0 - frac
        A[i, hi] += frac
    return A


def init_params(key):
    ks = jax.random.split(key, 8)
    bn = np.float32(1.0 / np.sqrt(1.0 + 1e-5))    # identity BatchNorm, folded
    p = {}
    p["w3"] = jax.random.normal(ks[0], (1, C0, 3, 3), jnp.float32) * 0.2 * bn
    p["w5"] = jax.random.normal(ks[1], (1, C0, 5, 5), jnp.float32) * 0.2 * bn
    p["w7"] = jax.random.normal(ks[2], (1, C0, 3, 3), jnp.float32) * 0.2 * bn
    p["w9"] = jax.random.normal(ks[3], (1, C0, 5, 5), jnp.float32) * 0.2 * bn
    p["wsp"] = jax.random.normal(ks[4], (1, 4, 3, 3), jnp.float32) * 0.2   # no norm
    p["bsp"] = jnp.full((1,), 0.1, jnp.float32)                            # conv bias
    p["wd"] = jax.random.normal(ks[5], (C0, C0, 3, 3), jnp.float32) * 0.2 * bn
    p["fw"] = jnp.ones((2,), jnp.float32)         # nn.Parameter(torch.ones(2))
    p["w1"] = jax.random.normal(ks[6], (C2, C2, 1, 1), jnp.float32) * 0.2
    p["w2"] = jax.random.normal(ks[7], (SC, C2, 1, 1), jnp.float32) * 0.2
    p["ah"] = jnp.asarray(_interp_matrix(H, HD))
    p["aw"] = jnp.asarray(_interp_matrix(W, WD))
    return p


# ---------------- pure-JAX reference (for verification) -----------------------
def ssia_fuse_ref(shallow, current, deep, params):
    def conv(x, w, stride=1, dilation=1, padding=0, bias=None):
        out = jax.lax.conv_general_dilated(
            x, w, window_strides=(stride, stride),
            padding=[(padding, padding), (padding, padding)],
            rhs_dilation=(dilation, dilation),
            dimension_numbers=("NCHW", "OIHW", "NCHW"))
        if bias is not None:
            out = out + bias.reshape(1, -1, 1, 1)
        return out

    s3 = _mish(conv(shallow, params["w3"], padding=1))
    s5 = _mish(conv(shallow, params["w5"], padding=2))
    s7 = _mish(conv(shallow, params["w7"], dilation=3, padding=3))
    s9 = _mish(conv(shallow, params["w9"], dilation=2, padding=4))
    sf = jnp.concatenate([s3, s5, s7, s9], axis=1)
    sw = _sigmoid(conv(sf, params["wsp"], stride=2, padding=1, bias=params["bsp"]))

    avg = jnp.mean(deep, axis=(2, 3), keepdims=True)
    mx = jnp.max(deep, axis=(2, 3), keepdims=True)
    wgt = _sigmoid(params["fw"])
    cf = avg * wgt[0] + mx * wgt[1]
    w1 = params["w1"].reshape(C2, C2)
    w2 = params["w2"].reshape(SC, C2)
    h = _mish(jnp.einsum("oc,bcxy->boxy", w1, cf))
    cw = _sigmoid(jnp.einsum("oc,bcxy->boxy", w2, h))

    down = _mish(conv(shallow, params["wd"], stride=2, padding=1))
    interp = jnp.einsum("hi,bcij,wj->bchw", params["ah"], deep, params["aw"])
    fused = jnp.concatenate([down, current, interp], axis=1)
    return fused * sw * cw


# ---------------- main ---------------------------------------------------------
if __name__ == "__main__":
    key = jax.random.PRNGKey(0)
    k_in, k_p = jax.random.split(key)
    k1, k2, k3 = jax.random.split(k_in, 3)
    shallow = jax.random.normal(k1, (B, C0, H2, W2), jnp.float32)
    current = jax.random.normal(k2, (B, C1, H, W), jnp.float32)
    deep = jax.random.normal(k3, (B, C2, HD, WD), jnp.float32)
    params = init_params(k_p)
    prep = prepare_params(params)

    out = jax.block_until_ready(ssia_fuse(shallow, current, deep, prep))
    assert out.shape == (B, SC, H, W), out.shape

    ref = ssia_fuse_ref(shallow, current, deep, params)
    err = float(jnp.max(jnp.abs(out - ref)))
    if not np.isfinite(err) or err > 1e-3:
        raise AssertionError(f"mismatch vs reference: max abs err = {err}")
    print("KERNEL_OK")
</pallas_src>

<mosaic_0001>
module attributes {stable_mosaic.version = 11 : i64} {
  func.func @_ssia_kernel(%arg0: i32, %arg1: memref<32x864xf32, #tpu.memory_space<vmem>>, %arg2: memref<864x96xf32, #tpu.memory_space<vmem>>, %arg3: memref<16x32xf32, #tpu.memory_space<vmem>>, %arg4: memref<8x32xf32, #tpu.memory_space<vmem>>, %arg5: memref<16x16xf32, #tpu.memory_space<vmem>>, %arg6: memref<64x24xf32, #tpu.memory_space<vmem>>, %arg7: memref<48x32xf32, #tpu.memory_space<vmem>>, %arg8: memref<16x32xf32, #tpu.memory_space<vmem>>, %arg9: memref<8x128xf32, #tpu.memory_space<vmem>>, %arg10: memref<16x8xf32, #tpu.memory_space<vmem>>, %arg11: memref<32x64xf32, #tpu.memory_space<vmem>>, %arg12: memref<16x16xf32, #tpu.memory_space<vmem>>, %arg13: memref<32x16xf32, #tpu.memory_space<vmem>>, %arg14: memref<16x32xf32, #tpu.memory_space<vmem>>, %arg15: memref<32x128xf32, #tpu.memory_space<vmem>>, %arg16: memref<3xf32, #tpu.memory_space<smem>>, %arg17: memref<16x128xf32, #tpu.memory_space<vmem>>) attributes {dimension_semantics = [#tpu.dimension_semantics<arbitrary>], iteration_bounds = array<i64: 1>, scalar_prefetch = 0 : i64, scratch_operands = 0 : i64, tpu.core_type = #tpu.core_type<tc>, window_params = [{pipeline_mode = #tpu.pipeline_mode<synchronous>, transform_indices = @transform_0, window_bounds = array<i64: 32, 864>}, {pipeline_mode = #tpu.pipeline_mode<synchronous>, transform_indices = @transform_1, window_bounds = array<i64: 864, 96>}, {pipeline_mode = #tpu.pipeline_mode<synchronous>, transform_indices = @transform_2, window_bounds = array<i64: 16, 32>}, {pipeline_mode = #tpu.pipeline_mode<synchronous>, transform_indices = @transform_3, window_bounds = array<i64: 8, 32>}, {pipeline_mode = #tpu.pipeline_mode<synchronous>, transform_indices = @transform_4, window_bounds = array<i64: 16, 16>}, {pipeline_mode = #tpu.pipeline_mode<synchronous>, transform_indices = @transform_5, window_bounds = array<i64: 64, 24>}, {pipeline_mode = #tpu.pipeline_mode<synchronous>, transform_indices = @transform_6, window_bounds = array<i64: 48, 32>}, {pipeline_mode = #tpu.pipeline_mode<synchronous>, transform_indices = @transform_7, window_bounds = array<i64: 16, 32>}, {pipeline_mode = #tpu.pipeline_mode<synchronous>, transform_indices = @transform_8, window_bounds = array<i64: 8, 128>}, {pipeline_mode = #tpu.pipeline_mode<synchronous>, transform_indices = @transform_9, window_bounds = array<i64: 16, 8>}, {pipeline_mode = #tpu.pipeline_mode<synchronous>, transform_indices = @transform_10, window_bounds = array<i64: 32, 64>}, {pipeline_mode = #tpu.pipeline_mode<synchronous>, transform_indices = @transform_11, window_bounds = array<i64: 16, 16>}, {pipeline_mode = #tpu.pipeline_mode<synchronous>, transform_indices = @transform_12, window_bounds = array<i64: 32, 16>}, {pipeline_mode = #tpu.pipeline_mode<synchronous>, transform_indices = @transform_13, window_bounds = array<i64: 16, 32>}, {pipeline_mode = #tpu.pipeline_mode<synchronous>, transform_indices = @transform_14, window_bounds = array<i64: 32, 128>}, {transform_indices = @transform_15, window_bounds = array<i64: 3>}, {pipeline_mode = #tpu.pipeline_mode<synchronous>, transform_indices = @transform_16, window_bounds = array<i64: 16, 128>}]} {
    %c0 = arith.constant 0 : index
    %c0_0 = arith.constant 0 : index
    %0 = vector.load %arg1[%c0, %c0_0] : memref<32x864xf32, #tpu.memory_space<vmem>>, vector<32x864xf32>
    %c0_1 = arith.constant 0 : index
    %c0_2 = arith.constant 0 : index
    %1 = vector.load %arg2[%c0_1, %c0_2] : memref<864x96xf32, #tpu.memory_space<vmem>>, vector<864x96xf32>
    %cst = arith.constant dense<0.000000e+00> : vector<32x96xf32>
    %2 = tpu.matmul %0, %1, %cst {dimension_numbers = #tpu.dot_dimension_numbers<[1], [0], [0], [1], [0, 0, 1, 1], [], []>} : vector<32x864xf32>, vector<864x96xf32>, vector<32x96xf32> -> vector<32x96xf32>
    %cst_3 = arith.constant 2.000000e+01 : f32
    %3 = vector.broadcast %cst_3 : f32 to vector<32x96xf32>
    %4 = arith.cmpf ogt, %2, %3 : vector<32x96xf32>
    %cst_4 = arith.constant 2.000000e+01 : f32
    %5 = vector.broadcast %cst_4 : f32 to vector<32x96xf32>
    %6 = arith.minimumf %2, %5 : vector<32x96xf32>
    %7 = math.exp %6 : vector<32x96xf32>
    %cst_5 = arith.constant 1.000000e+00 : f32
    %8 = vector.broadcast %cst_5 : f32 to vector<32x96xf32>
    %9 = arith.addf %8, %7 : vector<32x96xf32>
    %10 = math.log %9 : vector<32x96xf32>
    %11 = arith.select %4, %2, %10 : vector<32x96xi1>, vector<32x96xf32>
    %12 = math.tanh %11 : vector<32x96xf32>
    %13 = arith.mulf %2, %12 : vector<32x96xf32>
    %14 = vector.extract_strided_slice %13 {offsets = [0, 0], sizes = [32, 64], strides = [1, 1]} : vector<32x96xf32> to vector<32x64xf32>
    %15 = vector.extract_strided_slice %13 {offsets = [0, 64], sizes = [32, 32], strides = [1, 1]} : vector<32x96xf32> to vector<32x32xf32>
    %c0_6 = arith.constant 0 : index
    %c0_7 = arith.constant 0 : index
    %16 = vector.load %arg6[%c0_6, %c0_7] : memref<64x24xf32, #tpu.memory_space<vmem>>, vector<64x24xf32>
    %cst_8 = arith.constant dense<0.000000e+00> : vector<32x24xf32>
    %17 = tpu.matmul %14, %16, %cst_8 {dimension_numbers = #tpu.dot_dimension_numbers<[1], [0], [0], [1], [0, 0, 1, 1], [], []>} : vector<32x64xf32>, vector<64x24xf32>, vector<32x24xf32> -> vector<32x24xf32>
    %c0_9 = arith.constant 0 : index
    %c0_10 = arith.constant 0 : index
    %18 = vector.load %arg7[%c0_9, %c0_10] : memref<48x32xf32, #tpu.memory_space<vmem>>, vector<16x32xf32>
    %19 = vector.extract_strided_slice %17 {offsets = [0, 0], sizes = [32, 8], strides = [1, 1]} : vector<32x24xf32> to vector<32x8xf32>
    %cst_11 = arith.constant dense<0.000000e+00> : vector<16x8xf32>
    %20 = tpu.matmul %18, %19, %cst_11 {dimension_numbers = #tpu.dot_dimension_numbers<[1], [0], [0], [1], [0, 0, 1, 1], [], []>} : vector<16x32xf32>, vector<32x8xf32>, vector<16x8xf32> -> vector<16x8xf32>
    %c16 = arith.constant 16 : index
    %c0_12 = arith.constant 0 : index
    %21 = vector.load %arg7[%c16, %c0_12] : memref<48x32xf32, #tpu.memory_space<vmem>>, vector<16x32xf32>
    %22 = vector.extract_strided_slice %17 {offsets = [0, 8], sizes = [32, 8], strides = [1, 1]} : vector<32x24xf32> to vector<32x8xf32>
    %cst_13 = arith.constant dense<0.000000e+00> : vector<16x8xf32>
    %23 = tpu.matmul %21, %22, %cst_13 {dimension_numbers = #tpu.dot_dimension_numbers<[1], [0], [0], [1], [0, 0, 1, 1], [], []>} : vector<16x32xf32>, vector<32x8xf32>, vector<16x8xf32> -> vector<16x8xf32>
    %24 = arith.addf %20, %23 : vector<16x8xf32>
    %c32 = arith.constant 32 : index
    %c0_14 = arith.constant 0 : index
    %25 = vector.load %arg7[%c32, %c0_14] : memref<48x32xf32, #tpu.memory_space<vmem>>, vector<16x32xf32>
    %26 = vector.extract_strided_slice %17 {offsets = [0, 16], sizes = [32, 8], strides = [1, 1]} : vector<32x24xf32> to vector<32x8xf32>
    %cst_15 = arith.constant dense<0.000000e+00> : vector<16x8xf32>
    %27 = tpu.matmul %25, %26, %cst_15 {dimension_numbers = #tpu.dot_dimension_numbers<[1], [0], [0], [1], [0, 0, 1, 1], [], []>} : vector<16x32xf32>, vector<32x8xf32>, vector<16x8xf32> -> vector<16x8xf32>
    %28 = arith.addf %24, %27 : vector<16x8xf32>
    %c2 = arith.constant 2 : index
    %29 = memref.load %arg16[%c2] : memref<3xf32, #tpu.memory_space<smem>>
    %30 = vector.broadcast %29 : f32 to vector<1x1xf32>
    %31 = vector.broadcast %30 : vector<1x1xf32> to vector<16x8xf32>
    %32 = arith.addf %28, %31 : vector<16x8xf32>
    %cst_16 = arith.constant 0.000000e+00 : f32
    %33 = vector.broadcast %cst_16 : f32 to vector<16x8xf32>
    %34 = arith.subf %33, %32 : vector<16x8xf32>
    %35 = math.exp %34 : vector<16x8xf32>
    %cst_17 = arith.constant 1.000000e+00 : f32
    %36 = vector.broadcast %cst_17 : f32 to vector<16x8xf32>
    %37 = arith.addf %36, %35 : vector<16x8xf32>
    %cst_18 = arith.constant 1.000000e+00 : f32
    %38 = vector.broadcast %cst_18 : f32 to vector<16x8xf32>
    %39 = arith.divf %38, %37 : vector<16x8xf32>
    %c0_19 = arith.constant 0 : index
    %c0_20 = arith.constant 0 : index
    %40 = vector.load %arg9[%c0_19, %c0_20] : memref<8x128xf32, #tpu.memory_space<vmem>>, vector<8x128xf32>
    %cst_21 = arith.constant dense<0.000000e+00> : vector<16x128xf32>
    %41 = tpu.matmul %39, %40, %cst_21 {dimension_numbers = #tpu.dot_dimension_numbers<[1], [0], [0], [1], [0, 0, 1, 1], [], []>} : vector<16x8xf32>, vector<8x128xf32>, vector<16x128xf32> -> vector<16x128xf32>
    %c0_22 = arith.constant 0 : index
    %c0_23 = arith.constant 0 : index
    %42 = vector.load %arg8[%c0_22, %c0_23] : memref<16x32xf32, #tpu.memory_space<vmem>>, vector<16x32xf32>
    %cst_24 = arith.constant dense<0.000000e+00> : vector<16x32xf32>
    %43 = tpu.matmul %42, %15, %cst_24 {dimension_numbers = #tpu.dot_dimension_numbers<[1], [0], [0], [1], [0, 0, 1, 1], [], []>} : vector<16x32xf32>, vector<32x32xf32>, vector<16x32xf32> -> vector<16x32xf32>
    %c0_25 = arith.constant 0 : index
    %c0_26 = arith.constant 0 : index
    %44 = vector.load %arg4[%c0_25, %c0_26] : memref<8x32xf32, #tpu.memory_space<vmem>>, vector<8x32xf32>
    %c0_27 = arith.constant 0 : index
    %c0_28 = arith.constant 0 : index
    %45 = vector.load %arg11[%c0_27, %c0_28] : memref<32x64xf32, #tpu.memory_space<vmem>>, vector<32x64xf32>
    %cst_29 = arith.constant dense<0.000000e+00> : vector<8x64xf32>
    %46 = tpu.matmul %44, %45, %cst_29 {dimension_numbers = #tpu.dot_dimension_numbers<[1], [0], [0], [1], [0, 0, 1, 1], [], []>} : vector<8x32xf32>, vector<32x64xf32>, vector<8x64xf32> -> vector<8x64xf32>
    %c0_30 = arith.constant 0 : index
    %c0_31 = arith.constant 0 : index
    %47 = vector.load %arg10[%c0_30, %c0_31] : memref<16x8xf32, #tpu.memory_space<vmem>>, vector<16x8xf32>
    %cst_32 = arith.constant dense<0.000000e+00> : vector<16x64xf32>
    %48 = tpu.matmul %47, %46, %cst_32 {dimension_numbers = #tpu.dot_dimension_numbers<[1], [0], [0], [1], [0, 0, 1, 1], [], []>} : vector<16x8xf32>, vector<8x64xf32>, vector<16x64xf32> -> vector<16x64xf32>
    %c0_33 = arith.constant 0 : index
    %c0_34 = arith.constant 0 : index
    %49 = vector.load %arg5[%c0_33, %c0_34] : memref<16x16xf32, #tpu.memory_space<vmem>>, vector<16x16xf32>
    %cst_35 = arith.constant dense<0.000000e+00> : vector<16xf32>
    %50 = vector.multi_reduction <add>, %49, %cst_35 [1] : vector<16x16xf32> to vector<16xf32>
    %51 = vector.shape_cast %50 : vector<16xf32> to vector<16x1xf32>
    %cst_36 = arith.constant 1.600000e+01 : f32
    %52 = vector.broadcast %cst_36 : f32 to vector<16x1xf32>
    %53 = arith.divf %51, %52 : vector<16x1xf32>
    %c0_37 = arith.constant 0 : index
    %c0_38 = arith.constant 0 : index
    %54 = vector.load %arg5[%c0_37, %c0_38] : memref<16x16xf32, #tpu.memory_space<vmem>>, vector<16x16xf32>
    %cst_39 = arith.constant dense<0xFF800000> : vector<16xf32>
    %55 = vector.multi_reduction <maximumf>, %54, %cst_39 [1] : vector<16x16xf32> to vector<16xf32>
    %56 = vector.shape_cast %55 : vector<16xf32> to vector<16x1xf32>
    %c0_40 = arith.constant 0 : index
    %57 = memref.load %arg16[%c0_40] : memref<3xf32, #tpu.memory_space<smem>>
    %58 = vector.broadcast %57 : f32 to vector<1x1xf32>
    %c1 = arith.constant 1 : index
    %59 = memref.load %arg16[%c1] : memref<3xf32, #tpu.memory_space<smem>>
    %60 = vector.broadcast %59 : f32 to vector<1x1xf32>
    %61 = vector.broadcast %58 : vector<1x1xf32> to vector<16x1xf32>
    %62 = arith.mulf %53, %61 : vector<16x1xf32>
    %63 = vector.broadcast %60 : vector<1x1xf32> to vector<16x1xf32>
    %64 = arith.mulf %56, %63 : vector<16x1xf32>
    %65 = arith.addf %62, %64 : vector<16x1xf32>
    %c0_41 = arith.constant 0 : index
    %c0_42 = arith.constant 0 : index
    %66 = vector.load %arg12[%c0_41, %c0_42] : memref<16x16xf32, #tpu.memory_space<vmem>>, vector<16x16xf32>
    %cst_43 = arith.constant dense<0.000000e+00> : vector<16x1xf32>
    %67 = tpu.matmul %66, %65, %cst_43 {dimension_numbers = #tpu.dot_dimension_numbers<[1], [0], [0], [1], [0, 0, 1, 1], [], []>} : vector<16x16xf32>, vector<16x1xf32>, vector<16x1xf32> -> vector<16x1xf32>
    %cst_44 = arith.constant 2.000000e+01 : f32
    %68 = vector.broadcast %cst_44 : f32 to vector<16x1xf32>
    %69 = arith.cmpf ogt, %67, %68 : vector<16x1xf32>
    %cst_45 = arith.constant 2.000000e+01 : f32
    %70 = vector.broadcast %cst_45 : f32 to vector<16x1xf32>
    %71 = arith.minimumf %67, %70 : vector<16x1xf32>
    %72 = math.exp %71 : vector<16x1xf32>
    %cst_46 = arith.constant 1.000000e+00 : f32
    %73 = vector.broadcast %cst_46 : f32 to vector<16x1xf32>
    %74 = arith.addf %73, %72 : vector<16x1xf32>
    %75 = math.log %74 : vector<16x1xf32>
    %76 = arith.select %69, %67, %75 : vector<16x1xi1>, vector<16x1xf32>
    %77 = math.tanh %76 : vector<16x1xf32>
    %78 = arith.mulf %67, %77 : vector<16x1xf32>
    %c0_47 = arith.constant 0 : index
    %c0_48 = arith.constant 0 : index
    %79 = vector.load %arg13[%c0_47, %c0_48] : memref<32x16xf32, #tpu.memory_space<vmem>>, vector<32x16xf32>
    %cst_49 = arith.constant dense<0.000000e+00> : vector<32x1xf32>
    %80 = tpu.matmul %79, %78, %cst_49 {dimension_numbers = #tpu.dot_dimension_numbers<[1], [0], [0], [1], [0, 0, 1, 1], [], []>} : vector<32x16xf32>, vector<16x1xf32>, vector<32x1xf32> -> vector<32x1xf32>
    %cst_50 = arith.constant 0.000000e+00 : f32
    %81 = vector.broadcast %cst_50 : f32 to vector<32x1xf32>
    %82 = arith.subf %81, %80 : vector<32x1xf32>
    %83 = math.exp %82 : vector<32x1xf32>
    %cst_51 = arith.constant 1.000000e+00 : f32
    %84 = vector.broadcast %cst_51 : f32 to vector<32x1xf32>
    %85 = arith.addf %84, %83 : vector<32x1xf32>
    %cst_52 = arith.constant 1.000000e+00 : f32
    %86 = vector.broadcast %cst_52 : f32 to vector<32x1xf32>
    %87 = arith.divf %86, %85 : vector<32x1xf32>
    %c0_53 = arith.constant 0 : index
    %c0_54 = arith.constant 0 : index
    %88 = vector.load %arg14[%c0_53, %c0_54] : memref<16x32xf32, #tpu.memory_space<vmem>>, vector<16x32xf32>
    %c0_55 = arith.constant 0 : index
    %c0_56 = arith.constant 0 : index
    %89 = vector.load %arg15[%c0_55, %c0_56] : memref<32x128xf32, #tpu.memory_space<vmem>>, vector<32x128xf32>
    %90 = vector.broadcast %87 : vector<32x1xf32> to vector<32x128xf32>
    %91 = arith.mulf %90, %89 : vector<32x128xf32>
    %cst_57 = arith.constant dense<0.000000e+00> : vector<16x128xf32>
    %92 = tpu.matmul %88, %91, %cst_57 {dimension_numbers = #tpu.dot_dimension_numbers<[1], [0], [0], [1], [0, 0, 1, 1], [], []>} : vector<16x32xf32>, vector<32x128xf32>, vector<16x128xf32> -> vector<16x128xf32>
    %c0_58 = arith.constant 0 : index
    %c0_59 = arith.constant 0 : index
    %93 = vector.load %arg3[%c0_58, %c0_59] : memref<16x32xf32, #tpu.memory_space<vmem>>, vector<16x32xf32>
    %94 = tpu.concatenate %43, %93, %48 in 1 : vector<16x32xf32>, vector<16x32xf32>, vector<16x64xf32> -> vector<16x128xf32>
    %95 = arith.mulf %94, %41 : vector<16x128xf32>
    %96 = arith.mulf %95, %92 : vector<16x128xf32>
    %c0_60 = arith.constant 0 : index
    %c0_61 = arith.constant 0 : index
    %97 = vector.load %arg17[%c0_60, %c0_61] : memref<16x128xf32, #tpu.memory_space<vmem>>, vector<16x128xf32>
    tpu.vector_store %arg17[%c0_60, %c0_61], %96 {strides = array<i32>} : memref<16x128xf32, #tpu.memory_space<vmem>>, vector<16x128xf32>,
    return
  }
  func.func @transform_0(%arg0: i32) -> (i32, i32) {
    %c0_i32 = arith.constant 0 : i32
    %c0_i32_0 = arith.constant 0 : i32
    %c0_i32_1 = arith.constant 0 : i32
    return %c0_i32, %c0_i32_0 : i32, i32
  }
  func.func @transform_1(%arg0: i32) -> (i32, i32) {
    %c0_i32 = arith.constant 0 : i32
    %c0_i32_0 = arith.constant 0 : i32
    %c0_i32_1 = arith.constant 0 : i32
    return %c0_i32, %c0_i32_0 : i32, i32
  }
  func.func @transform_2(%arg0: i32) -> (i32, i32) {
    %c0_i32 = arith.constant 0 : i32
    %c0_i32_0 = arith.constant 0 : i32
    %c0_i32_1 = arith.constant 0 : i32
    return %c0_i32, %c0_i32_0 : i32, i32
  }
  func.func @transform_3(%arg0: i32) -> (i32, i32) {
    %c0_i32 = arith.constant 0 : i32
    %c0_i32_0 = arith.constant 0 : i32
    %c0_i32_1 = arith.constant 0 : i32
    return %c0_i32, %c0_i32_0 : i32, i32
  }
  func.func @transform_4(%arg0: i32) -> (i32, i32) {
    %c0_i32 = arith.constant 0 : i32
    %c0_i32_0 = arith.constant 0 : i32
    %c0_i32_1 = arith.constant 0 : i32
    return %c0_i32, %c0_i32_0 : i32, i32
  }
  func.func @transform_5(%arg0: i32) -> (i32, i32) {
    %c0_i32 = arith.constant 0 : i32
    %c0_i32_0 = arith.constant 0 : i32
    %c0_i32_1 = arith.constant 0 : i32
    return %c0_i32, %c0_i32_0 : i32, i32
  }
  func.func @transform_6(%arg0: i32) -> (i32, i32) {
    %c0_i32 = arith.constant 0 : i32
    %c0_i32_0 = arith.constant 0 : i32
    %c0_i32_1 = arith.constant 0 : i32
    return %c0_i32, %c0_i32_0 : i32, i32
  }
  func.func @transform_7(%arg0: i32) -> (i32, i32) {
    %c0_i32 = arith.constant 0 : i32
    %c0_i32_0 = arith.constant 0 : i32
    %c0_i32_1 = arith.constant 0 : i32
    return %c0_i32, %c0_i32_0 : i32, i32
  }
  func.func @transform_8(%arg0: i32) -> (i32, i32) {
    %c0_i32 = arith.constant 0 : i32
    %c0_i32_0 = arith.constant 0 : i32
    %c0_i32_1 = arith.constant 0 : i32
    return %c0_i32, %c0_i32_0 : i32, i32
  }
  func.func @transform_9(%arg0: i32) -> (i32, i32) {
    %c0_i32 = arith.constant 0 : i32
    %c0_i32_0 = arith.constant 0 : i32
    %c0_i32_1 = arith.constant 0 : i32
    return %c0_i32, %c0_i32_0 : i32, i32
  }
  func.func @transform_10(%arg0: i32) -> (i32, i32) {
    %c0_i32 = arith.constant 0 : i32
    %c0_i32_0 = arith.constant 0 : i32
    %c0_i32_1 = arith.constant 0 : i32
    return %c0_i32, %c0_i32_0 : i32, i32
  }
  func.func @transform_11(%arg0: i32) -> (i32, i32) {
    %c0_i32 = arith.constant 0 : i32
    %c0_i32_0 = arith.constant 0 : i32
    %c0_i32_1 = arith.constant 0 : i32
    return %c0_i32, %c0_i32_0 : i32, i32
  }
  func.func @transform_12(%arg0: i32) -> (i32, i32) {
    %c0_i32 = arith.constant 0 : i32
    %c0_i32_0 = arith.constant 0 : i32
    %c0_i32_1 = arith.constant 0 : i32
    return %c0_i32, %c0_i32_0 : i32, i32
  }
  func.func @transform_13(%arg0: i32) -> (i32, i32) {
    %c0_i32 = arith.constant 0 : i32
    %c0_i32_0 = arith.constant 0 : i32
    %c0_i32_1 = arith.constant 0 : i32
    return %c0_i32, %c0_i32_0 : i32, i32
  }
  func.func @transform_14(%arg0: i32) -> (i32, i32) {
    %c0_i32 = arith.constant 0 : i32
    %c0_i32_0 = arith.constant 0 : i32
    %c0_i32_1 = arith.constant 0 : i32
    return %c0_i32, %c0_i32_0 : i32, i32
  }
  func.func @transform_15(%arg0: i32) -> i32 {
    %c0_i32 = arith.constant 0 : i32
    %c0_i32_0 = arith.constant 0 : i32
    return %c0_i32 : i32
  }
  func.func @transform_16(%arg0: i32) -> (i32, i32) {
    %c0_i32 = arith.constant 0 : i32
    %c0_i32_0 = arith.constant 0 : i32
    %c0_i32_1 = arith.constant 0 : i32
    return %c0_i32, %c0_i32_0 : i32, i32
  }
}

</mosaic_0001>

<bundles_post_ra>
// kernel: tpu_custom_call.1
= control target key start
LH: loop header
LB: loop body
LE: loop exit
PB: predicated region body
PF: predicated region fallthrough
CT: control target
= control target key end

     0   :  { %s2954_s0 = inlined_call_operand.vmem [shape: f32[32,864], index: 0, kind: input, shape index: {}]   ;;  %s2955_s1 = inlined_call_operand.vmem [shape: f32[864,96], index: 1, kind: input, shape index: {}]   ;;  %s2956_s2 = inlined_call_operand.vmem [shape: f32[16,32], index: 2, kind: input, shape index: {}]   ;;  %s2957_s3 = inlined_call_operand.vmem [shape: f32[8,32], index: 3, kind: input, shape index: {}]   ;;  %s2958_s4 = inlined_call_operand.vmem [shape: f32[16,16], index: 4, kind: input, shape index: {}]   ;;  %s2959_s5 = inlined_call_operand.vmem [shape: f32[64,24], index: 5, kind: input, shape index: {}]   ;;  %s2960_s6 = inlined_call_operand.vmem [shape: f32[48,32], index: 6, kind: input, shape index: {}]   ;;  %s2961_s7 = inlined_call_operand.vmem [shape: f32[16,32], index: 7, kind: input, shape index: {}]   ;;  %s2962_s8 = inlined_call_operand.vmem [shape: f32[8,128], index: 8, kind: input, shape index: {}]   ;;  %s2963_s9 = inlined_call_operand.vmem [shape: f32[16,8], index: 9, kind: input, shape index: {}]   ;;  %s2964_s10 = inlined_call_operand.vmem [shape: f32[32,64], index: 10, kind: input, shape index: {}]   ;;  %s2965_s11 = inlined_call_operand.vmem [shape: f32[16,16], index: 11, kind: input, shape index: {}]   ;;  %s2966_s12 = inlined_call_operand.vmem [shape: f32[32,16], index: 12, kind: input, shape index: {}]   ;;  %s2967_s13 = inlined_call_operand.vmem [shape: f32[16,32], index: 13, kind: input, shape index: {}]   ;;  %s2968_s14 = inlined_call_operand.vmem [shape: f32[32,128], index: 14, kind: input, shape index: {}]   ;;  %s2969_s15 = inlined_call_operand.vmem [shape: f32[3], index: 15, kind: input, shape index: {}]   ;;  %s2970_s16 = inlined_call_operand.hbm [shape: f32[16,128], index: 16, kind: output, shape index: {}]  }
   0x1   :  { %2972 = sst [smem:[#allocation8_spill]] %s2954_s0 }
   0x2   :  { %21 = vsyncpa [#allocation4], 0 }
   0x3   :  { %22 = vsyncpa [#allocation3], 0  ;;  %s59_s23 = sshll.u32 %s2969_s15, 4  ;;  %s60_s23 = int_to_ptr.vmem [resolvable:$true] %s59_s23 }
   0x4   :  { %s2209_s24 = scalar_lea.vmem %s60_s23, 16  ;;  %p2214_p1 = scmp.lt.s32.totalorder %s60_s23, %s60_s23 }
   0x5   :  { %p2210_p0 = scmp.ne.s32.totalorder %s60_s23, %s2209_s24  ;;  %p2215_p2 = scmp.lt.s32.totalorder %s2209_s24, %s2209_s24 }
   0x7   :  { %p2216_p3 = por %p2215_p2, %p2214_p1 }
   0x9   :  { %p2217_p4 = pnand %p2216_p3, %p2210_p0 }
   0xb   :  { %2220 = shalt.err (!%p2217_p4)
}
   0xc   :  { %s2245_s25 = smov [#allocation2]  }
   0xd   :  { %62 = dma.vmem_to_smem %s60_s23, 16, %s2245_s25, [#allocation4]  }
   0xe   :  { %2241 = dma.done.wait [#allocation4], 16  }
   0xf   :  { %2242 = vsyncadd [#allocation4], 4294967280 }
  0x10   :  { %66 = sfence }
  0x11   :  { %v126_v0 = vld [vmem:[%s2955_s1 + $0xf8] sm:$0xff]  ;;  %v125_v4 = vld [vmem:[%s2955_s1 + $0xf0] sm:$0xff]  ;;  %v124_v8 = vld [vmem:[%s2955_s1 + $0xe8] sm:$0xff]  ;;  %s2973_s26 = sld [smem:[#allocation8_spill]]  ;;  %vm203_vm0 = vcmask 785408   ;;  %vm1339_vm1 = vcmask 130048  }
  0x12   :  { %v158_v1 = vld [vmem:[%s2955_s1 + $0x1f8] sm:$0xff]  ;;  %1780 = vmatprep.subr.mxu0 %v126_v0  ;;  %v157_v5 = vld [vmem:[%s2955_s1 + $0x1f0] sm:$0xff]  ;;  %v156_v9 = vld [vmem:[%s2955_s1 + $0x1e8] sm:$0xff]  ;;  %vm604_vm6 = vcmask 523264   ;;  %vm722_vm7 = vcmask 261120   ;;  %s2247_s23 = smov 112  }
  0x13   :  { %v110_v2 = vld [vmem:[%s2955_s1 + $0x78] sm:$0xff]  ;;  %1824 = vmatprep.subr.mxu1 %v158_v1  ;;  %v109_v6 = vld [vmem:[%s2955_s1 + $0x70] sm:$0xff]  ;;  %v108_v10 = vld [vmem:[%s2955_s1 + $0x68] sm:$0xff]  ;;  %s2248_s29 = smov 64   ;;  %s2835_s17 = sld [smem:[#allocation2 + $0x1]]  ;;  %vm2250_vm8 = vmmov 0  }
  0x14   :  { %v142_v3 = vld [vmem:[%s2955_s1 + $0x178] sm:$0xff]  ;;  %1781 = vmatpush3.msra.mxu0 %v110_v2  ;;  %v141_v7 = vld [vmem:[%s2955_s1 + $0x170] sm:$0xff]  ;;  %v140_v11 = vld [vmem:[%s2955_s1 + $0x168] sm:$0xff]  ;;  %s2837_s18 = sld [smem:[#allocation2]]  ;;  %vm999_vm9 = vcmask 64512   ;;  %s2252_s28 = smov 32  }
  0x15   :  { %1825 = vmatpush3.msra.mxu1 %v142_v3  ;;  %1782 = vmatprep.subr.mxu0 %v125_v4  ;;  %v123_v12 = vld [vmem:[%s2955_s1 + $0xe0] sm:$0xff]  ;;  %v122_v16 = vld [vmem:[%s2955_s1 + $0xd8] sm:$0xff]  ;;  %v121_v20 = vld [vmem:[%s2955_s1 + $0xd0] sm:$0xff] }
  0x16   :  { %1826 = vmatprep.subr.mxu1 %v157_v5  ;;  %1783 = vmatpush3.msra.mxu0 %v109_v6  ;;  %v155_v13 = vld [vmem:[%s2955_s1 + $0x1e0] sm:$0xff]  ;;  %v154_v17 = vld [vmem:[%s2955_s1 + $0x1d8] sm:$0xff]  ;;  %v153_v21 = vld [vmem:[%s2955_s1 + $0x1d0] sm:$0xff] }
  0x17   :  { %1827 = vmatpush3.msra.mxu1 %v141_v7  ;;  %1784 = vmatprep.subr.mxu0 %v124_v8  ;;  %v107_v14 = vld [vmem:[%s2955_s1 + $0x60] sm:$0xff]  ;;  %v106_v18 = vld [vmem:[%s2955_s1 + $0x58] sm:$0xff]  ;;  %v105_v22 = vld [vmem:[%s2955_s1 + $0x50] sm:$0xff] }
  0x18   :  { %1828 = vmatprep.subr.mxu1 %v156_v9  ;;  %v139_v15 = vld [vmem:[%s2955_s1 + $0x160] sm:$0xff]  ;;  %1785 = vmatpush3.msra.mxu0 %v108_v10  ;;  %v138_v19 = vld [vmem:[%s2955_s1 + $0x158] sm:$0xff]  ;;  %v137_v23 = vld [vmem:[%s2955_s1 + $0x150] sm:$0xff] }
  0x19   :  { %1829 = vmatpush3.msra.mxu1 %v140_v11  ;;  %1786 = vmatprep.subr.mxu0 %v123_v12  ;;  %v120_v24 = vld [vmem:[%s2955_s1 + $0xc8] sm:$0xff]  ;;  %v119_v28 = vld [vmem:[%s2955_s1 + $0xc0] sm:$0xff]  ;;  %v118_v32 = vld [vmem:[%s2955_s1 + $0xb8] sm:$0xff] }
  0x1a   :  { %1830 = vmatprep.subr.mxu1 %v155_v13  ;;  %1787 = vmatpush3.msra.mxu0 %v107_v14  ;;  %v152_v25 = vld [vmem:[%s2955_s1 + $0x1c8] sm:$0xff]  ;;  %v151_v29 = vld [vmem:[%s2955_s1 + $0x1c0] sm:$0xff]  ;;  %v150_v33 = vld [vmem:[%s2955_s1 + $0x1b8] sm:$0xff] }
  0x1b   :  { %1831 = vmatpush3.msra.mxu1 %v139_v15  ;;  %1788 = vmatprep.subr.mxu0 %v122_v16  ;;  %v104_v26 = vld [vmem:[%s2955_s1 + $0x48] sm:$0xff]  ;;  %v103_v30 = vld [vmem:[%s2955_s1 + $0x40] sm:$0xff]  ;;  %v102_v34 = vld [vmem:[%s2955_s1 + $0x38] sm:$0xff] }
  0x1c   :  { %1832 = vmatprep.subr.mxu1 %v154_v17  ;;  %1789 = vmatpush3.msra.mxu0 %v106_v18  ;;  %v136_v27 = vld [vmem:[%s2955_s1 + $0x148] sm:$0xff]  ;;  %v135_v31 = vld [vmem:[%s2955_s1 + $0x140] sm:$0xff]  ;;  %v134_v35 = vld [vmem:[%s2955_s1 + $0x138] sm:$0xff] }
  0x1d   :  { %1833 = vmatpush3.msra.mxu1 %v138_v19  ;;  %1790 = vmatprep.subr.mxu0 %v121_v20  ;;  %v117_v36 = vld [vmem:[%s2955_s1 + $0xb0] sm:$0xff]  ;;  %v116_v40 = vld [vmem:[%s2955_s1 + $0xa8] sm:$0xff]  ;;  %v115_v44 = vld [vmem:[%s2955_s1 + $0xa0] sm:$0xff] }
  0x1e   :  { %1834 = vmatprep.subr.mxu1 %v153_v21  ;;  %1791 = vmatpush3.msra.mxu0 %v105_v22  ;;  %v149_v37 = vld [vmem:[%s2955_s1 + $0x1b0] sm:$0xff]  ;;  %v148_v41 = vld [vmem:[%s2955_s1 + $0x1a8] sm:$0xff]  ;;  %v147_v45 = vld [vmem:[%s2955_s1 + $0x1a0] sm:$0xff] }
  0x1f   :  { %1835 = vmatpush3.msra.mxu1 %v137_v23  ;;  %1792 = vmatprep.subr.mxu0 %v120_v24  ;;  %v101_v38 = vld [vmem:[%s2955_s1 + $0x30] sm:$0xff]  ;;  %v100_v42 = vld [vmem:[%s2955_s1 + $0x28] sm:$0xff]  ;;  %v99_v46 = vld [vmem:[%s2955_s1 + $0x20] sm:$0xff] }
  0x20   :  { %1836 = vmatprep.subr.mxu1 %v152_v25  ;;  %1793 = vmatpush3.msra.mxu0 %v104_v26  ;;  %v133_v39 = vld [vmem:[%s2955_s1 + $0x130] sm:$0xff]  ;;  %v132_v43 = vld [vmem:[%s2955_s1 + $0x128] sm:$0xff]  ;;  %v131_v47 = vld [vmem:[%s2955_s1 + $0x120] sm:$0xff] }
  0x21   :  { %1837 = vmatpush3.msra.mxu1 %v136_v27  ;;  %1794 = vmatprep.subr.mxu0 %v119_v28  ;;  %v114_v48 = vld [vmem:[%s2955_s1 + $0x98] sm:$0xff]  ;;  %v113_v52 = vld [vmem:[%s2955_s1 + $0x90] sm:$0xff]  ;;  %v112_v56 = vld [vmem:[%s2955_s1 + $0x88] sm:$0xff] }
  0x22   :  { %1838 = vmatprep.subr.mxu1 %v151_v29  ;;  %1795 = vmatpush3.msra.mxu0 %v103_v30  ;;  %v146_v49 = vld [vmem:[%s2955_s1 + $0x198] sm:$0xff]  ;;  %v145_v53 = vld [vmem:[%s2955_s1 + $0x190] sm:$0xff]  ;;  %v144_v57 = vld [vmem:[%s2955_s1 + $0x188] sm:$0xff] }
  0x23   :  { %1839 = vmatpush3.msra.mxu1 %v135_v31  ;;  %1796 = vmatprep.subr.mxu0 %v118_v32  ;;  %v98_v50 = vld [vmem:[%s2955_s1 + $0x18] sm:$0xff]  ;;  %v97_v54 = vld [vmem:[%s2955_s1 + $0x10] sm:$0xff]  ;;  %v96_v58 = vld [vmem:[%s2955_s1 + $0x8] sm:$0xff] }
  0x24   :  { %1840 = vmatprep.subr.mxu1 %v150_v33  ;;  %1797 = vmatpush3.msra.mxu0 %v102_v34  ;;  %v130_v51 = vld [vmem:[%s2955_s1 + $0x118] sm:$0xff]  ;;  %v129_v55 = vld [vmem:[%s2955_s1 + $0x110] sm:$0xff]  ;;  %v128_v59 = vld [vmem:[%s2955_s1 + $0x108] sm:$0xff] }
  0x25   :  { %1841 = vmatpush3.msra.mxu1 %v134_v35  ;;  %1798 = vmatprep.subr.mxu0 %v117_v36  ;;  %v111_v60 = vld [vmem:[%s2955_s1 + $0x80] sm:$0xff]  ;;  %v68_v63 = vld [vmem:[%s2973_s26 + $0x8] sm:$0xff]  ;;  %v70_v1 = vld [vmem:[%s2973_s26 + $0x18] sm:$0xff] }
  0x26   :  { %1842 = vmatprep.subr.mxu1 %v149_v37  ;;  %1799 = vmatpush3.msra.mxu0 %v101_v38  ;;  %v143_v61 = vld [vmem:[%s2955_s1 + $0x180] sm:$0xff]  ;;  %v69_v3 = vld [vmem:[%s2973_s26 + $0x10] sm:$0xff]  ;;  %v190_v4 = vld [vmem:[%s2955_s1 + $0x2f8] sm:$0xff] }
  0x27   :  { %1843 = vmatpush3.msra.mxu1 %v133_v39  ;;  %1800 = vmatprep.subr.mxu0 %v116_v40  ;;  %v95_v62 = vld [vmem:[%s2955_s1] sm:$0xff]  ;;  %v202_v5 = vld [vmem:[%s2955_s1 + $0x358] sm:$0xff]  ;;  %v189_v7 = vld [vmem:[%s2955_s1 + $0x2f0] sm:$0xff] }
  0x28   :  { %1844 = vmatprep.subr.mxu1 %v148_v41  ;;  %1801 = vmatpush3.msra.mxu0 %v100_v42  ;;  %v127_v0 = vld [vmem:[%s2955_s1 + $0x100] sm:$0xff]  ;;  %v174_v6 = vld [vmem:[%s2955_s1 + $0x278] sm:$0xff]  ;;  %v201_v8 = vld [vmem:[%s2955_s1 + $0x350] sm:$0xff] }
  0x29   :  { %1845 = vmatpush3.msra.mxu1 %v132_v43  ;;  %1802 = vmatprep.subr.mxu0 %v115_v44  ;;  %v67_v2 = vld [vmem:[%s2973_s26] sm:$0xff]  ;;  %v173_v9 = vld [vmem:[%s2955_s1 + $0x270] sm:$0xff]  ;;  %v188_v10 = vld [vmem:[%s2955_s1 + $0x2e8] sm:$0xff] }
  0x2a   :  { %1846 = vmatprep.subr.mxu1 %v147_v45  ;;  %1803 = vmatpush3.msra.mxu0 %v99_v46  ;;  %v200_v11 = vld [vmem:[%s2955_s1 + $0x348] sm:$0xff]  ;;  %v75_v13 = vld [vmem:[%s2973_s26 + $0x40] sm:$0xff]  ;;  %v77_v15 = vld [vmem:[%s2973_s26 + $0x50] sm:$0xff] }
  0x2b   :  { %1847 = vmatpush3.msra.mxu1 %v131_v47  ;;  %1804 = vmatprep.subr.mxu0 %v114_v48  ;;  %v172_v12 = vld [vmem:[%s2955_s1 + $0x268] sm:$0xff]  ;;  %v187_v14 = vld [vmem:[%s2955_s1 + $0x2e0] sm:$0xff]  ;;  %v186_v17 = vld [vmem:[%s2955_s1 + $0x2d8] sm:$0xff] }
  0x2c   :  { %1848 = vmatprep.subr.mxu1 %v146_v49  ;;  %1805 = vmatpush3.msra.mxu0 %v98_v50  ;;  %v171_v16 = vld [vmem:[%s2955_s1 + $0x260] sm:$0xff]  ;;  %v74_v18 = vld [vmem:[%s2973_s26 + $0x38] sm:$0xff]  ;;  %v76_v20 = vld [vmem:[%s2973_s26 + $0x48] sm:$0xff] }
  0x2d   :  { %1849 = vmatpush3.msra.mxu1 %v130_v51  ;;  %1806 = vmatprep.subr.mxu0 %v113_v52  ;;  %v170_v19 = vld [vmem:[%s2955_s1 + $0x258] sm:$0xff]  ;;  %v185_v21 = vld [vmem:[%s2955_s1 + $0x2d0] sm:$0xff]  ;;  %v199_v22 = vld [vmem:[%s2955_s1 + $0x340] sm:$0xff] }
  0x2e   :  { %1850 = vmatprep.subr.mxu1 %v145_v53  ;;  %1807 = vmatpush3.msra.mxu0 %v97_v54  ;;  %v169_v23 = vld [vmem:[%s2955_s1 + $0x250] sm:$0xff]  ;;  %v184_v24 = vld [vmem:[%s2955_s1 + $0x2c8] sm:$0xff]  ;;  %v198_v25 = vld [vmem:[%s2955_s1 + $0x338] sm:$0xff] }
  0x2f   :  { %1851 = vmatpush3.msra.mxu1 %v129_v55  ;;  %1808 = vmatprep.subr.mxu0 %v112_v56  ;;  %v168_v26 = vld [vmem:[%s2955_s1 + $0x248] sm:$0xff]  ;;  %v82_v27 = vld [vmem:[%s2973_s26 + $0x78] sm:$0xff]  ;;  %v183_v28 = vld [vmem:[%s2955_s1 + $0x2c0] sm:$0xff] }
  0x30   :  { %1852 = vmatprep.subr.mxu1 %v144_v57  ;;  %1809 = vmatpush3.msra.mxu0 %v96_v58  ;;  %v84_v29 = vld [vmem:[%s2973_s26 + $0x88] sm:$0xff]  ;;  %v167_v30 = vld [vmem:[%s2955_s1 + $0x240] sm:$0xff]  ;;  %v182_v31 = vld [vmem:[%s2955_s1 + $0x2b8] sm:$0xff] }
  0x31   :  { %1853 = vmatpush3.msra.mxu1 %v128_v59  ;;  %1810 = vmatprep.subr.mxu0 %v111_v60  ;;  %v81_v32 = vld [vmem:[%s2973_s26 + $0x70] sm:$0xff]  ;;  %v166_v33 = vld [vmem:[%s2955_s1 + $0x238] sm:$0xff]  ;;  %v83_v34 = vld [vmem:[%s2973_s26 + $0x80] sm:$0xff] }
  0x32   :  { %1854 = vmatprep.subr.mxu1 %v143_v61  ;;  %1811 = vmatpush3.msra.mxu0 %v95_v62  ;;  %v181_v35 = vld [vmem:[%s2955_s1 + $0x2b0] sm:$0xff]  ;;  %v180_v38 = vld [vmem:[%s2955_s1 + $0x2a8] sm:$0xff]  ;;  %v179_v42 = vld [vmem:[%s2955_s1 + $0x2a0] sm:$0xff] }
  0x33   :  { %280 = vmatprep.mubr.f32.mxu0 %v68_v63  ;;  %1855 = vmatpush3.msra.mxu1 %v127_v0  ;;  %v197_v36 = vld [vmem:[%s2955_s1 + $0x330] sm:$0xff]  ;;  %v196_v39 = vld [vmem:[%s2955_s1 + $0x328] sm:$0xff]  ;;  %v91_v43 = vld [vmem:[%s2973_s26 + $0xc0] sm:$0xff] }
  0x34   :  { %365 = vmatprep.mubr.f32.mxu1 %v70_v1  ;;  %281 = vmatmul.mubr.f32.vlgmr.msra.gmra.mxu0 %v67_v2  ;;  %v165_v37 = vld [vmem:[%s2955_s1 + $0x230] sm:$0xff]  ;;  %v164_v40 = vld [vmem:[%s2955_s1 + $0x228] sm:$0xff]  ;;  %v163_v44 = vld [vmem:[%s2955_s1 + $0x220] sm:$0xff] }
  0x35   :  { %366 = vmatmul.mubr.f32.vlgmr.msra.gmra.mxu1 %v69_v3  ;;  %1868 = vmatprep.subr.mxu0 %v190_v4  ;;  %v89_v41 = vld [vmem:[%s2973_s26 + $0xb0] sm:$0xff]  ;;  %v178_v45 = vld [vmem:[%s2955_s1 + $0x298] sm:$0xff]  ;;  %v88_v46 = vld [vmem:[%s2973_s26 + $0xa8] sm:$0xff] }
  0x36   :  { %1991 = vmatprep.subr.mxu1 %v202_v5  ;;  %1869 = vmatpush3.msra.mxu0 %v174_v6  ;;  %v162_v47 = vld [vmem:[%s2955_s1 + $0x218] sm:$0xff]  ;;  %v177_v49 = vld [vmem:[%s2955_s1 + $0x290] sm:$0xff]  ;;  %v195_v50 = vld [vmem:[%s2955_s1 + $0x320] sm:$0xff] }
  0x37   :  { %1992 = vmatpush3.msra.mxu1 %v202_v5  ;;  %1870 = vmatprep.subr.mxu0 %v189_v7  ;;  %v90_v48 = vld [vmem:[%s2973_s26 + $0xb8] sm:$0xff]  ;;  %v161_v51 = vld [vmem:[%s2955_s1 + $0x210] sm:$0xff]  ;;  %v176_v52 = vld [vmem:[%s2955_s1 + $0x288] sm:$0xff] }
  0x38   :  { %1993 = vmatprep.subr.mxu1 %v201_v8  ;;  %1871 = vmatpush3.msra.mxu0 %v173_v9  ;;  %v194_v53 = vld [vmem:[%s2955_s1 + $0x318] sm:$0xff]  ;;  %v160_v54 = vld [vmem:[%s2955_s1 + $0x208] sm:$0xff]  ;;  %v175_v55 = vld [vmem:[%s2955_s1 + $0x280] sm:$0xff] }
  0x39   :  { %1994 = vmatpush3.msra.mxu1 %v201_v8  ;;  %1872 = vmatprep.subr.mxu0 %v188_v10  ;;  %v193_v56 = vld [vmem:[%s2955_s1 + $0x310] sm:$0xff]  ;;  %v159_v57 = vld [vmem:[%s2955_s1 + $0x200] sm:$0xff]  ;;  %v72_v58 = vld [vmem:[%s2973_s26 + $0x28] sm:$0xff] }
  0x3a   :  { %1995 = vmatprep.subr.mxu1 %v200_v11  ;;  %1873 = vmatpush3.msra.mxu0 %v172_v12  ;;  %v71_v59 = vld [vmem:[%s2973_s26 + $0x20] sm:$0xff]  ;;  %v192_v60 = vld [vmem:[%s2955_s1 + $0x308] sm:$0xff]  ;;  %v73_v62 = vld [vmem:[%s2973_s26 + $0x30] sm:$0xff] }
  0x3b   :  { %285 = vmatprep.mubr.f32.mxu0 %v75_v13  ;;  %1874 = vmatprep.subr.mxu0 %v187_v14  ;;  %v79_v61 = vld [vmem:[%s2973_s26 + $0x60] sm:$0xff]  ;;  %v78_v0 = vld [vmem:[%s2973_s26 + $0x58] sm:$0xff]  ;;  %v80_v1 = vld [vmem:[%s2973_s26 + $0x68] sm:$0xff] }
  0x3c   :  { %370 = vmatprep.mubr.f32.mxu1 %v77_v15  ;;  %1875 = vmatpush3.msra.mxu0 %v171_v16  ;;  %v191_v63 = vld [vmem:[%s2955_s1 + $0x300] sm:$0xff]  ;;  %v86_v2 = vld [vmem:[%s2973_s26 + $0x98] sm:$0xff]  ;;  %v85_v4 = vld [vmem:[%s2973_s26 + $0x90] sm:$0xff] }
  0x3d   :  { %1996 = vmatpush3.msra.mxu1 %v200_v11  ;;  %1876 = vmatprep.subr.mxu0 %v186_v17  ;;  %v87_v3 = vld [vmem:[%s2973_s26 + $0xa0] sm:$0xff]  ;;  %v93_v5 = vld [vmem:[%s2973_s26 + $0xd0] sm:$0xff]  ;;  %v94_v6 = vld [vmem:[%s2973_s26 + $0xd8] sm:$0xff] }
  0x3e   :  { %286 = vmatmul.mubr.f32.gmra.mxu0 %v74_v18  ;;  %371 = vmatmul.mubr.f32.gmra.mxu1 %v76_v20  ;;  %v92_v7 = vld [vmem:[%s2973_s26 + $0xc8] sm:$0xff]  ;;  %v603_v8 = vld [vmem:[%s2959_s5 + $0x38] sm:$0xff]  ;;  %v602_v9 = vld [vmem:[%s2959_s5 + $0x30] sm:$0xff] }
  0x3f   :  { %1877 = vmatpush3.msra.mxu0 %v170_v19  ;;  %1997 = vmatprep.subr.mxu1 %v199_v22  ;;  %v601_v10 = vld [vmem:[%s2959_s5 + $0x28] sm:$0xff]  ;;  %v600_v11 = vld [vmem:[%s2959_s5 + $0x20] sm:$0xff]  ;;  %v599_v12 = vld [vmem:[%s2959_s5 + $0x18] sm:$0xff] }
  0x40   :  { %1878 = vmatprep.subr.mxu0 %v185_v21  ;;  %1998 = vmatpush3.msra.mxu1 %v199_v22  ;;  %v598_v13 = vld [vmem:[%s2959_s5 + $0x10] sm:$0xff]  ;;  %v597_v14 = vld [vmem:[%s2959_s5 + $0x8] sm:$0xff]  ;;  %v596_v15 = vld [vmem:[%s2959_s5] sm:$0xff] }
  0x41   :  { %1879 = vmatpush3.msra.mxu0 %v169_v23  ;;  %1999 = vmatprep.subr.mxu1 %v198_v25  ;;  %v2783_v16 = vld [vmem:[%s2958_s4] sm:$0xff]  ;;  %v2788_v17 = vld [vmem:[%s2958_s4 + $0x8] sm:$0xff]  ;;  %s2246_s4 = smov 120  }
  0x42   :  { %1880 = vmatprep.subr.mxu0 %v184_v24  ;;  %290 = vmatprep.mubr.f32.mxu0 %v82_v27  ;;  %v1340_v18 = vsel %vm1339_vm1, %v2783_v16, 0.0  ;;  %v1343_v19 = vsel %vm1339_vm1, %v2788_v17, 0.0 }
  0x43   :  { %1881 = vmatpush3.msra.mxu0 %v168_v26  ;;  %375 = vmatprep.mubr.f32.mxu1 %v84_v29 }
  0x44   :  { %1882 = vmatprep.subr.mxu0 %v183_v28  ;;  %2000 = vmatpush3.msra.mxu1 %v198_v25 }
  0x45   :  { %1883 = vmatpush3.msra.mxu0 %v167_v30  ;;  %376 = vmatmul.mubr.f32.gmra.mxu1 %v83_v34 }
  0x46   :  { %1884 = vmatprep.subr.mxu0 %v182_v31  ;;  %291 = vmatmul.mubr.f32.gmra.mxu0 %v81_v32 }
  0x47   :  { %1885 = vmatpush3.msra.mxu0 %v166_v33  ;;  %2001 = vmatprep.subr.mxu1 %v197_v36 }
  0x48   :  { %1886 = vmatprep.subr.mxu0 %v181_v35  ;;  %2002 = vmatpush3.msra.mxu1 %v197_v36 }
  0x49   :  { %1887 = vmatpush3.msra.mxu0 %v165_v37  ;;  %2003 = vmatprep.subr.mxu1 %v196_v39 }
  0x4a   :  { %1888 = vmatprep.subr.mxu0 %v180_v38  ;;  %295 = vmatprep.mubr.f32.mxu0 %v89_v41 }
  0x4b   :  { %1889 = vmatpush3.msra.mxu0 %v164_v40  ;;  %380 = vmatprep.mubr.f32.mxu1 %v91_v43 }
  0x4c   :  { %1890 = vmatprep.subr.mxu0 %v179_v42  ;;  %2004 = vmatpush3.msra.mxu1 %v196_v39 }
  0x4d   :  { %1891 = vmatpush3.msra.mxu0 %v163_v44  ;;  %381 = vmatmul.mubr.f32.gmra.mxu1 %v90_v48 }
  0x4e   :  { %1892 = vmatprep.subr.mxu0 %v178_v45  ;;  %296 = vmatmul.mubr.f32.gmra.mxu0 %v88_v46 }
  0x4f   :  { %1893 = vmatpush3.msra.mxu0 %v162_v47  ;;  %2005 = vmatprep.subr.mxu1 %v195_v50 }
  0x50   :  { %1894 = vmatprep.subr.mxu0 %v177_v49  ;;  %2006 = vmatpush3.msra.mxu1 %v195_v50 }
  0x51   :  { %1895 = vmatpush3.msra.mxu0 %v161_v51  ;;  %2007 = vmatprep.subr.mxu1 %v194_v53 }
  0x52   :  { %1896 = vmatprep.subr.mxu0 %v176_v52  ;;  %2008 = vmatpush3.msra.mxu1 %v194_v53 }
  0x53   :  { %1897 = vmatpush3.msra.mxu0 %v160_v54  ;;  %2009 = vmatprep.subr.mxu1 %v193_v56 }
  0x54   :  { %1898 = vmatprep.subr.mxu0 %v175_v55  ;;  %450 = vmatprep.mubr.f32.mxu0 %v72_v58 }
  0x55   :  { %1899 = vmatpush3.msra.mxu0 %v159_v57  ;;  %2010 = vmatpush3.msra.mxu1 %v193_v56 }
  0x56   :  { %451 = vmatmul.mubr.f32.vlgmr.msra.gmra.mxu0 %v71_v59  ;;  %2011 = vmatprep.subr.mxu1 %v192_v60 }
  0x57   :  { %455 = vmatprep.mubr.f32.mxu0 %v79_v61  ;;  %2012 = vmatpush3.msra.mxu1 %v192_v60 }
  0x58   :  { %2015 = vmatprep.mubr.msk.f32.mxu1 %vm203_vm0, %v73_v62  ;;  %2013 = vmatprep.subr.mxu1 %v191_v63 }
  0x59   :  { %2014 = vmatpush3.msra.mxu1 %v191_v63  ;;  %1341 = vadd.xlane.f32.xlu1 %v1340_v18 }
  0x5a   :  { %456 = vmatmul.mubr.f32.gmra.mxu0 %v78_v0  ;;  %2016 = vmatmul.mubr.msk.f32.vlgmr.msra.gmra.mxu1 %vm203_vm0, %v80_v1 }
  0x5b   :  { %460 = vmatprep.mubr.f32.mxu0 %v86_v2  ;;  %2018 = vmatprep.mubr.msk.f32.mxu1 %vm203_vm0, %v87_v3 }
  0x5c   :  { %2021 = vmatprep.subr.mxu1 %v603_v8  ;;  %1344 = vadd.xlane.f32.xlu0 %v1343_v19 }
  0x5d   :  { %2022 = vmatpush3.msra.mxu1 %v603_v8 }
  0x5e   :  { %461 = vmatmul.mubr.f32.gmra.mxu0 %v85_v4  ;;  %2019 = vmatmul.mubr.msk.f32.gmra.mxu1 %vm203_vm0, %v94_v6 }
  0x5f   :  { %465 = vmatprep.mubr.f32.mxu0 %v93_v5  ;;  %2023 = vmatprep.subr.mxu1 %v602_v9 }
  0x60   :  { %2024 = vmatpush3.msra.mxu1 %v602_v9 }
  0x61   :  { %2025 = vmatprep.subr.mxu1 %v601_v10 }
  0x62   :  { %466 = vmatmul.mubr.f32.gmra.mxu0 %v92_v7  ;;  %2026 = vmatpush3.msra.mxu1 %v601_v10 }
  0x63   :  { %2027 = vmatprep.subr.mxu1 %v600_v11 }
  0x64   :  { %2028 = vmatpush3.msra.mxu1 %v600_v11 }
  0x65   :  { %2029 = vmatprep.subr.mxu1 %v599_v12 }
  0x66   :  { %2030 = vmatpush3.msra.mxu1 %v599_v12 }
  0x67   :  { %2031 = vmatprep.subr.mxu1 %v598_v13 }
  0x68   :  { %2032 = vmatpush3.msra.mxu1 %v598_v13 }
  0x69   :  { %2033 = vmatprep.subr.mxu1 %v597_v14 }
  0x6a   :  { %2034 = vmatpush3.msra.mxu1 %v597_v14 }
  0x6b   :  { %2035 = vmatprep.subr.mxu1 %v596_v15 }
  0x6c   :  { %2036 = vmatpush3.msra.mxu1 %v596_v15 }
  0xf4   :  { %v1812_v20 = vpop.f32.mrf.mxu0 }
  0xf5   :  { %v1856_v22 = vpop.f32.mrf.mxu1 }
  0xf6   :  { %v1813_v21 = vpop.f32.mrf.mxu0 }
  0xf7   :  { %v1857_v24 = vpop.f32.mrf.mxu1  ;;  %v1814_v34 = vadd.f32 %v1813_v21, %v1812_v20 }
  0xf8   :  { %v1858_v35 = vadd.f32 %v1857_v24, %v1856_v22 }
  0xfa   :  { %v368_v39 = vadd.f32 %v1858_v35, %v1814_v34 }
  0xfe   :  { %v1815_v23 = vpop.f32.mrf.mxu0  ;;  %v1859_v26 = vpop.f32.mrf.mxu1 }
 0x100   :  { %v1816_v25 = vpop.f32.mrf.mxu0  ;;  %v1860_v28 = vpop.f32.mrf.mxu1 }
 0x101   :  { %v1817_v40 = vadd.f32 %v1816_v25, %v1815_v23  ;;  %v1861_v41 = vadd.f32 %v1860_v28, %v1859_v26 }
 0x103   :  { %v373_v50 = vadd.f32 %v1861_v41, %v1817_v40 }
 0x105   :  { %v1862_v30 = vpop.f32.mrf.mxu1 }
 0x106   :  { %v1818_v27 = vpop.f32.mrf.mxu0 }
 0x107   :  { %v1863_v32 = vpop.f32.mrf.mxu1 }
 0x108   :  { %v1819_v29 = vpop.f32.mrf.mxu0  ;;  %v1864_v48 = vadd.f32 %v1863_v32, %v1862_v30 }
 0x109   :  { %v1820_v47 = vadd.f32 %v1819_v29, %v1818_v27 }
 0x10b   :  { %v378_v57 = vadd.f32 %v1864_v48, %v1820_v47  ;;  %v704_v48 = vld [vmem:[%s2960_s6 + $0x10] sm:$0xff] }
 0x10c   :  { %2051 = vmatprep.mubr.msk.f32.mxu0 %vm722_vm7, %v704_v48 }
 0x10d   :  { %v1865_v36 = vpop.f32.mrf.mxu1 }
 0x10e   :  { %v1821_v31 = vpop.f32.mrf.mxu0 }
 0x10f   :  { %v1866_v42 = vpop.f32.mrf.mxu1 }
 0x110   :  { %v1822_v33 = vpop.f32.mrf.mxu0  ;;  %v1867_v61 = vadd.f32 %v1866_v42, %v1865_v36 }
 0x111   :  { %v1823_v60 = vadd.f32 %v1822_v33, %v1821_v31 }
 0x113   :  { %v383_v6 = vadd.f32 %v1867_v61, %v1823_v60  ;;  %v705_v60 = vld [vmem:[%s2960_s6 + $0x18] sm:$0xff]  ;;  %v885_v61 = vld [vmem:[%s2960_s6 + $0x20] sm:$0xff] }
 0x116   :  { %v1900_v37 = vpop.f32.mrf.mxu0 }
 0x118   :  { %v1901_v38 = vpop.f32.mrf.mxu0 }
 0x119   :  { %v1902_v43 = vadd.f32 %v1901_v38, %v1900_v37 }
 0x11a   :  { %v1903_v44 = vpop.f32.mrf.mxu0  ;;  %v2017_v45 = vpop.f32.mrf.mxu1 }
 0x11b   :  { %v453_v46 = vadd.f32 %v1902_v43, %v368_v39 }
 0x11c   :  { %v1904_v49 = vpop.f32.mrf.mxu0  ;;  %v537_v52 = vpop.f32.mrf.mxu1 }
 0x11d   :  { %v1905_v51 = vadd.f32 %v1904_v49, %v1903_v44  ;;  %v2794_v53 = vadd.f32 %v537_v52, %v453_v46  ;;  %v1349_v52 = vsel %vm1339_vm1, %v2783_v16, -inf  ;;  %v1342_v16 = vpop.xlane.xlu1 %1341 }
 0x11e   :  { %v1906_v54 = vpop.f32.mrf.mxu0  ;;  %v2020_v56 = vpop.f32.mrf.mxu1 }
 0x11f   :  { %v458_v55 = vadd.f32 %v1905_v51, %v373_v50  ;;  %v560_v58 = vmin.f32 %v2794_v53, 20.0  ;;  %vm556_vm2 = vcmp.gt.f32.partialorder %v2794_v53, 20.0  ;;  %v1352_v51 = vsel %vm1339_vm1, %v2788_v17, -inf  ;;  %v998_v17 = vld [vmem:[%s2962_s8] sm:$0xff] }
 0x120   :  { %v1907_v59 = vpop.f32.mrf.mxu0  ;;  %v547_v2 = vpop.f32.mrf.mxu1 }
 0x121   :  { %v543_v62 = vadd.f32 %v2017_v45, %v458_v55  ;;  %v1908_v63 = vadd.f32 %v1907_v59, %v1906_v54  ;;  %v564_v0 = vmul.f32 1.442695, %v560_v58  ;;  %v703_v54 = vld [vmem:[%s2960_s6 + $0x8] sm:$0xff]  ;;  %v1345_v55 = vpop.xlane.xlu0 %1344 }
 0x122   :  { %v1909_v1 = vpop.f32.mrf.mxu0 }
 0x123   :  { %v561_v3 = vmin.f32 %v543_v62, 20.0  ;;  %v463_v4 = vadd.f32 %v1908_v63, %v378_v57  ;;  %2149 = vpow2.f32 %v564_v0  ;;  %vm557_vm3 = vcmp.gt.f32.partialorder %v543_v62, 20.0 }
 0x124   :  { %v1910_v5 = vpop.f32.mrf.mxu0 }
 0x125   :  { %v566_v7 = vmul.f32 1.442695, %v561_v3  ;;  %v1911_v8 = vadd.f32 %v1910_v5, %v1909_v1  ;;  %v548_v9 = vadd.f32 %v547_v2, %v463_v4  ;;  %v886_v4 = vld [vmem:[%s2960_s6 + $0x28] sm:$0xff]  ;;  %v1180_v5 = vld [vmem:[%s2964_s10 + $0x18] sm:$0xff] }
 0x127   :  { %2151 = vpow2.f32 %v566_v7  ;;  %v468_v10 = vadd.f32 %v1911_v8, %v383_v6  ;;  %v562_v11 = vmin.f32 %v548_v9, 20.0  ;;  %vm558_vm4 = vcmp.gt.f32.partialorder %v548_v9, 20.0 }
 0x128   :  { %v1360_v6 = vstv %s2835_s17  ;;  %v1348_v7 = vmul.f32 0.0625, %v1345_v55  ;;  %v2249_v8 = vmov 0.0  }
 0x129   :  { %v553_v12 = vadd.f32 %v2020_v56, %v468_v10  ;;  %v568_v13 = vmul.f32 1.442695, %v562_v11  ;;  %v1347_v11 = vmul.f32 0.0625, %v1342_v16 }
 0x12b   :  { %v563_v14 = vmin.f32 %v553_v12, 20.0  ;;  %2153 = vpow2.f32 %v568_v13  ;;  %vm559_vm5 = vcmp.gt.f32.partialorder %v553_v12, 20.0  ;;  %v1178_v13 = vld [vmem:[%s2964_s10 + $0x8] sm:$0xff] }
 0x12d   :  { %v570_v15 = vmul.f32 1.442695, %v563_v14  ;;  %v1357_v14 = vstv %s2837_s18 }
 0x12f   :  { %2155 = vpow2.f32 %v570_v15  ;;  %v1359_v15 = vmul.f32 %v1357_v14, %v1348_v7  ;;  %v1255_v7 = vld [vmem:[%s2963_s9 + $0x8] sm:$0xff] }
 0x130   :  { %v2150_v18 = vpop.eup %2149 }
 0x131   :  { %v572_v19 = vadd.f32 1.0, %v2150_v18 }
 0x133   :  { %2157 = vlog2.f32 %v572_v19  ;;  %v1177_v19 = vld [vmem:[%s2964_s10] sm:$0xff] }
 0x134   :  { %v2152_v20 = vpop.eup %2151 }
 0x135   :  { %v573_v21 = vadd.f32 1.0, %v2152_v20  ;;  %v1176_v20 = vld [vmem:[%s2957_s3] sm:$0xff]  ;;  %s1763_s3 = sld [smem:[#allocation2 + $0x2]] }
 0x137   :  { %2159 = vlog2.f32 %v573_v21  ;;  %v1358_v21 = vmul.f32 %v1357_v14, %v1347_v11  ;;  %v1470_v14 = vld [vmem:[%s2966_s12 + $0x10] sm:$0xff] }
 0x138   :  { %v2154_v22 = vpop.eup %2153 }
 0x139   :  { %v574_v23 = vadd.f32 1.0, %v2154_v22 }
 0x13b   :  { %2161 = vlog2.f32 %v574_v23  ;;  %v1365_v23 = vld [vmem:[%s2965_s11] sm:$0xff] }
 0x13c   :  { %v2156_v24 = vpop.eup %2155 }
 0x13d   :  { %v575_v25 = vadd.f32 1.0, %v2156_v24 }
 0x13f   :  { %2163 = vlog2.f32 %v575_v25  ;;  %v1366_v25 = vld [vmem:[%s2965_s11 + $0x8] sm:$0xff] }
 0x140   :  { %v2158_v26 = vpop.eup %2157 }
 0x141   :  { %v577_v27 = vmul.f32 0.6931472, %v2158_v26 }
 0x143   :  { %v584_v29 = vsel %vm556_vm2, %v2794_v53, %v577_v27 }
 0x144   :  { %v2160_v28 = vpop.eup %2159  ;;  %2165 = vtanh.f32 %v584_v29 }
 0x145   :  { %v579_v30 = vmul.f32 0.6931472, %v2160_v28 }
 0x147   :  { %v585_v31 = vsel %vm557_vm3, %v543_v62, %v579_v30 }
 0x148   :  { %v2162_v32 = vpop.eup %2161  ;;  %2167 = vtanh.f32 %v585_v31 }
 0x149   :  { %v581_v33 = vmul.f32 0.6931472, %v2162_v32  ;;  %v983_v32 = vstv %s1763_s3 }
 0x14b   :  { %v586_v34 = vsel %vm558_vm4, %v548_v9, %v581_v33 }
 0x14c   :  { %v2164_v35 = vpop.eup %2163  ;;  %2169 = vtanh.f32 %v586_v34 }
 0x14d   :  { %v583_v36 = vmul.f32 0.6931472, %v2164_v35 }
 0x14f   :  { %v587_v37 = vsel %vm559_vm5, %v553_v12, %v583_v36 }
 0x150   :  { %2171 = vtanh.f32 %v587_v37 }
 0x151   :  { %v2166_v38 = vpop.eup %2165 }
 0x152   :  { %v592_v39 = vmul.f32 %v2166_v38, %v2794_v53  ;;  %v702_v53 = vld [vmem:[%s2960_s6] sm:$0xff] }
 0x154   :  { %2037 = vmatprep.mubr.msk.f32.mxu1 %vm604_vm6, %v592_v39 }
 0x155   :  { %v2168_v40 = vpop.eup %2167 }
 0x156   :  { %v593_v41 = vmul.f32 %v2168_v40, %v543_v62 }
 0x158   :  { %2038 = vmatmul.mubr.msk.f32.vlgmr.msra.gmra.mxu1 %vm604_vm6, %v593_v41 }
 0x159   :  { %v2170_v42 = vpop.eup %2169 }
 0x15a   :  { %v594_v43 = vmul.f32 %v2170_v42, %v548_v9  ;;  %v1179_v9 = vld [vmem:[%s2964_s10 + $0x10] sm:$0xff] }
 0x15c   :  { %2040 = vmatprep.mubr.msk.f32.mxu1 %vm604_vm6, %v594_v43 }
 0x15d   :  { %v2172_v44 = vpop.eup %2171 }
 0x15e   :  { %v595_v45 = vmul.f32 %v2172_v44, %v553_v12 }
 0x160   :  { %2041 = vmatmul.mubr.msk.f32.gmra.mxu1 %vm604_vm6, %v595_v45 }
 0x161   :  { %2062 = vmatprep.mubr.msk.f32.mxu1 %vm722_vm7, %v702_v53 }
 0x218   :  { %v2039_v46 = vpop.f32.mrf.mxu1 }
 0x219   :  { %712 = vrot.lane.b32.xlu1 %v2039_v46, %s2246_s4 }
 0x21a   :  { %v683_v47 = vpop.f32.mrf.mxu1 }
 0x21d   :  { %710 = vrot.lane.b32.xlu1 %v683_v47, %s2246_s4 }
 0x220   :  { %v2042_v49 = vpop.f32.mrf.mxu1 }
 0x221   :  { %893 = vrot.lane.b32.xlu1 %v2042_v49, %s2247_s23  ;;  %716 = vrot.lane.b32.xlu0 %v2042_v49, %s2246_s4 }
 0x222   :  { %2054 = vmatprep.subr.mxu1 %v2042_v49  ;;  %v693_v50 = vpop.f32.mrf.mxu1 }
 0x223   :  { %2055 = vmatpush3.msra.mxu1 %v2042_v49 }
 0x224   :  { %2056 = vmatprep.subr.mxu1 %v693_v50 }
 0x225   :  { %2057 = vmatpush3.msra.mxu1 %v693_v50  ;;  %714 = vrot.lane.b32.xlu0 %v693_v50, %s2246_s4 }
 0x226   :  { %2058 = vmatprep.subr.mxu1 %v2039_v46 }
 0x227   :  { %2059 = vmatpush3.msra.mxu1 %v2039_v46 }
 0x228   :  { %2060 = vmatprep.subr.mxu1 %v683_v47 }
 0x229   :  { %2061 = vmatpush3.msra.mxu1 %v683_v47 }
 0x22a   :  { %2063 = vmatmul.mubr.msk.f32.vlgmr.msra.gmra.mxu1 %vm722_vm7, %v703_v54  ;;  %2076 = vmatprep.subr.mxu1 %v998_v17 }
 0x22b   :  { %2077 = vmatpush3.msra.mxu1 %v998_v17 }
 0x244   :  { %1353 = vmax.xlane.f32.xlu0 %v1352_v51 }
 0x245   :  { %1350 = vmax.xlane.f32.xlu1 %v1349_v52 }
 0x256   :  { %889 = vrot.lane.b32.xlu1 %v2039_v46, %s2247_s23 }
 0x25a   :  { %1087 = vrot.lane.b32.xlu1 %v594_v43, %s2248_s29  ;;  %891 = vrot.lane.b32.xlu0 %v693_v50, %s2247_s23 }
 0x25e   :  { %1083 = vrot.lane.b32.xlu1 %v592_v39, %s2248_s29  ;;  %887 = vrot.lane.b32.xlu0 %v683_v47, %s2247_s23 }
 0x262   :  { %1089 = vrot.lane.b32.xlu0 %v595_v45, %s2248_s29 }
 0x266   :  { %1085 = vrot.lane.b32.xlu0 %v593_v41, %s2248_s29 }
 0x28b   :  { %v713_v56 = vpop.permute.xlu1 %712 }
 0x28f   :  { %v711_v58 = vpop.permute.xlu1 %710 }
 0x293   :  { %v717_v57 = vpop.permute.xlu0 %716  ;;  %v894_v62 = vpop.permute.xlu1 %893 }
 0x294   :  { %2043 = vmatprep.subr.mxu0 %v717_v57 }
 0x295   :  { %2044 = vmatpush3.msra.mxu0 %v717_v57 }
 0x297   :  { %v715_v59 = vpop.permute.xlu0 %714 }
 0x298   :  { %2045 = vmatprep.subr.mxu0 %v715_v59 }
 0x299   :  { %2046 = vmatpush3.msra.mxu0 %v715_v59 }
 0x29a   :  { %2047 = vmatprep.subr.mxu0 %v713_v56 }
 0x29b   :  { %2048 = vmatpush3.msra.mxu0 %v713_v56 }
 0x29c   :  { %2049 = vmatprep.subr.mxu0 %v711_v58 }
 0x29d   :  { %2050 = vmatpush3.msra.mxu0 %v711_v58  ;;  %v1081_v58 = vld [vmem:[%s2961_s7] sm:$0xff] }
 0x29e   :  { %2065 = vmatprep.subr.mxu0 %v894_v62  ;;  %2052 = vmatmul.mubr.msk.f32.vlgmr.msra.gmra.mxu0 %vm722_vm7, %v705_v60 }
 0x29f   :  { %2066 = vmatpush3.msra.mxu0 %v894_v62  ;;  %2073 = vmatprep.mubr.msk.f32.mxu0 %vm722_vm7, %v885_v61 }
 0x2cd   :  { %v1354_v63 = vpop.xlane.xlu0 %1353 }
 0x2ce   :  { %v1351_v0 = vpop.xlane.xlu1 %1350  ;;  %v1362_v12 = vmul.f32 %v1360_v6, %v1354_v63 }
 0x2cf   :  { %v1361_v18 = vmul.f32 %v1360_v6, %v1351_v0 }
 0x2d0   :  { %v1364_v22 = vadd.f32 %v1362_v12, %v1359_v15  ;;  %v1471_v15 = vld [vmem:[%s2966_s12 + $0x18] sm:$0xff] }
 0x2d1   :  { %v892_v1 = vpop.permute.xlu0 %891  ;;  %v1363_v24 = vadd.f32 %v1361_v18, %v1358_v21  ;;  %v2251_v18 = vmov 0  }
 0x2d2   :  { %v890_v2 = vpop.permute.xlu1 %889  ;;  %2067 = vmatprep.subr.mxu0 %v892_v1  ;;  %2147 = vset.pattern.permute.xlu0 %v2251_v18 }
 0x2d3   :  { %2068 = vmatpush3.msra.mxu0 %v892_v1  ;;  %v1082_v1 = vld [vmem:[%s2961_s7 + $0x8] sm:$0xff]  ;;  %2148 = vset.pattern.permute.xlu1 %v2251_v18 }
 0x2d4   :  { %2069 = vmatprep.subr.mxu0 %v890_v2 }
 0x2d5   :  { %2070 = vmatpush3.msra.mxu0 %v890_v2  ;;  %v888_v3 = vpop.permute.xlu0 %887 }
 0x2d6   :  { %2071 = vmatprep.subr.mxu0 %v888_v3  ;;  %v1088_v60 = vpop.permute.xlu1 %1087 }
 0x2d7   :  { %2072 = vmatpush3.msra.mxu0 %v888_v3  ;;  %v1254_v3 = vld [vmem:[%s2963_s9] sm:$0xff] }
 0x2d8   :  { %2074 = vmatmul.mubr.msk.f32.vlgmr.msra.gmra.mxu0 %vm722_vm7, %v886_v4  ;;  %2092 = vmatprep.subr.mxu0 %v2249_v8 }
 0x2d9   :  { %2093 = vmatpush3.msra.mxu0 %v1180_v5  ;;  %v2850_v10 = vpop.permute.xlu0 %1089  ;;  %2100 = vmatprep.mubr.msk.f32.mxu0 %vm2250_vm8, %v2249_v8 }
 0x2da   :  { %2081 = vmatprep.subr.mxu1 %v2850_v10  ;;  %2094 = vmatprep.subr.mxu0 %v2249_v8  ;;  %v1084_v63 = vpop.permute.xlu1 %1083 }
 0x2db   :  { %2095 = vmatpush3.msra.mxu0 %v1179_v9 }
 0x2dc   :  { %2096 = vmatprep.subr.mxu0 %v2249_v8 }
 0x2dd   :  { %2097 = vmatpush3.msra.mxu0 %v1178_v13  ;;  %v1086_v61 = vpop.permute.xlu0 %1085  ;;  %v1469_v13 = vld [vmem:[%s2966_s12 + $0x8] sm:$0xff] }
 0x2de   :  { %2098 = vmatprep.subr.mxu0 %v2249_v8  ;;  %v1468_v8 = vld [vmem:[%s2966_s12] sm:$0xff] }
 0x2df   :  { %2099 = vmatpush3.msra.mxu0 %v1177_v19 }
 0x2e0   :  { %2101 = vmatmul.mubr.msk.f32.vlgmr.msra.gmra.mxu0 %vm722_vm7, %v1176_v20  ;;  %2108 = vmatprep.subr.mxu0 %v1364_v22 }
 0x2e1   :  { %2109 = vmatpush3.msra.mxu0 %v1364_v22  ;;  %2112 = vmatprep.mubr.msk.f32.mxu0 %vm1339_vm1, %v1365_v23 }
 0x2e2   :  { %2110 = vmatprep.subr.mxu0 %v1363_v24 }
 0x2e3   :  { %2111 = vmatpush3.msra.mxu0 %v1363_v24 }
 0x2e4   :  { %2113 = vmatmul.mubr.msk.f32.vlgmr.msra.gmra.mxu0 %vm1339_vm1, %v1366_v25 }
 0x2ea   :  { %v2064_v27 = vpop.f32.mrf.mxu1 }
 0x2ec   :  { %v876_v29 = vpop.f32.mrf.mxu1 }
 0x35e   :  { %v2053_v26 = vpop.f32.mrf.mxu0 }
 0x35f   :  { %v882_v30 = vadd.f32 %v2064_v27, %v2053_v26 }
 0x360   :  { %v795_v28 = vpop.f32.mrf.mxu0 }
 0x361   :  { %v877_v33 = vadd.f32 %v876_v29, %v795_v28 }
 0x398   :  { %v2075_v31 = vpop.f32.mrf.mxu0 }
 0x399   :  { %v981_v34 = vadd.f32 %v2075_v31, %v882_v30 }
 0x39a   :  { %v971_v35 = vpop.f32.mrf.mxu0 }
 0x39b   :  { %v985_v36 = vadd.f32 %v983_v32, %v981_v34  ;;  %v980_v37 = vadd.f32 %v971_v35, %v877_v33 }
 0x39d   :  { %v987_v38 = vsub.f32 0.0, %v985_v36  ;;  %v984_v39 = vadd.f32 %v983_v32, %v980_v37 }
 0x39f   :  { %v990_v40 = vmul.f32 1.442695, %v987_v38  ;;  %v986_v41 = vsub.f32 0.0, %v984_v39 }
 0x3a0   :  { %v1250_v42 = vpop.f32.mrf.mxu0 }
 0x3a1   :  { %2173 = vpow2.f32 %v990_v40  ;;  %v988_v43 = vmul.f32 1.442695, %v986_v41 }
 0x3a2   :  { %v2102_v44 = vpop.f32.mrf.mxu0 }
 0x3a3   :  { %2175 = vpow2.f32 %v988_v43 }
 0x3a4   :  { %v2114_v45 = vpop.f32.mrf.mxu0 }
 0x3a5   :  { %v1451_v46 = vmin.f32 %v2114_v45, 20.0  ;;  %vm1449_vm10 = vcmp.gt.f32.partialorder %v2114_v45, 20.0 }
 0x3a6   :  { %v1439_v47 = vpop.f32.mrf.mxu0 }
 0x3a7   :  { %v1454_v48 = vmul.f32 1.442695, %v1451_v46  ;;  %v1450_v49 = vmin.f32 %v1439_v47, 20.0  ;;  %vm1448_vm11 = vcmp.gt.f32.partialorder %v1439_v47, 20.0 }
 0x3a9   :  { %2177 = vpow2.f32 %v1454_v48  ;;  %v1452_v50 = vmul.f32 1.442695, %v1450_v49  ;;  %v1705_v49 = vld [vmem:[%s2956_s2 + $0x8] sm:$0xff] }
 0x3ab   :  { %2179 = vpow2.f32 %v1452_v50  ;;  %v1593_v50 = vld [vmem:[%s2967_s13] sm:$0xff] }
 0x3ac   :  { %2133 = vmatprep.mubr.msk.f32.mxu0 %vm722_vm7, %v1593_v50 }
 0x3ae   :  { %v2174_v51 = vpop.eup %2173 }
 0x3af   :  { %v993_v53 = vadd.f32 1.0, %v2174_v51  ;;  %v1704_v51 = vld [vmem:[%s2956_s2] sm:$0xff] }
 0x3b0   :  { %v2176_v52 = vpop.eup %2175 }
 0x3b1   :  { %v992_v54 = vadd.f32 1.0, %v2176_v52  ;;  %v1598_v52 = vld [vmem:[%s2968_s14 + $0x18] sm:$0xff] }
 0x3b3   :  { %2181 = vrcp.f32 %v992_v54  ;;  %v1597_v54 = vld [vmem:[%s2968_s14 + $0x10] sm:$0xff] }
 0x3b4   :  { %2183 = vrcp.f32 %v993_v53 }
 0x3b6   :  { %v2178_v17 = vpop.eup %2177 }
 0x3b7   :  { %v1457_v16 = vadd.f32 1.0, %v2178_v17 }
 0x3b8   :  { %v2180_v55 = vpop.eup %2179 }
 0x3b9   :  { %2185 = vlog2.f32 %v1457_v16  ;;  %v1456_v56 = vadd.f32 1.0, %v2180_v55 }
 0x3bb   :  { %2187 = vlog2.f32 %v1456_v56  ;;  %v1596_v56 = vld [vmem:[%s2968_s14 + $0x8] sm:$0xff] }
 0x3c0   :  { %v2182_v57 = vpop.eup %2181 }
 0x3c1   :  { %v2184_v59 = vpop.eup %2183  ;;  %2078 = vmatprep.mubr.msk.f32.mxu1 %vm999_vm9, %v2182_v57  ;;  %v1595_v57 = vld [vmem:[%s2968_s14] sm:$0xff] }
 0x3c2   :  { %2079 = vmatmul.mubr.msk.f32.vlgmr.msra.gmra.mxu1 %vm999_vm9, %v2184_v59 }
 0x3c3   :  { %2082 = vmatpush3.msra.mxu1 %v2850_v10  ;;  %2089 = vmatprep.mubr.msk.f32.mxu1 %vm722_vm7, %v1081_v58 }
 0x3c4   :  { %2083 = vmatprep.subr.mxu1 %v1088_v60 }
 0x3c5   :  { %2084 = vmatpush3.msra.mxu1 %v1088_v60 }
 0x3c6   :  { %v2186_v62 = vpop.eup %2185  ;;  %2085 = vmatprep.subr.mxu1 %v1086_v61 }
 0x3c7   :  { %v1461_v0 = vmul.f32 0.6931472, %v2186_v62  ;;  %2086 = vmatpush3.msra.mxu1 %v1086_v61  ;;  %v1594_v62 = vld [vmem:[%s2967_s13 + $0x8] sm:$0xff]  ;;  %s2253_s13 = smov [#allocation5]  }
 0x3c8   :  { %v2188_v2 = vpop.eup %2187  ;;  %2087 = vmatprep.subr.mxu1 %v1084_v63  ;;  %s1737_s14 = sshll.u32 %s2253_s13, 4  ;;  %s1738_s14 = int_to_ptr.vmem [resolvable:$true] %s1737_s14 }
 0x3c9   :  { %v1463_v4 = vsel %vm1449_vm10, %v2114_v45, %v1461_v0  ;;  %v1459_v5 = vmul.f32 0.6931472, %v2188_v2  ;;  %2088 = vmatpush3.msra.mxu1 %v1084_v63  ;;  %s2221_s18 = scalar_lea.vmem %s1738_s14, 256  ;;  %p2226_p6 = scmp.lt.s32.totalorder %s1738_s14, %s1738_s14 }
 0x3ca   :  { %2189 = vtanh.f32 %v1463_v4  ;;  %2103 = vmatprep.subr.mxu1 %v1250_v42  ;;  %2090 = vmatmul.mubr.msk.f32.vlgmr.msra.gmra.mxu1 %vm722_vm7, %v1082_v1  ;;  %p2222_p5 = scmp.ne.s32.totalorder %s1738_s14, %s2221_s18  ;;  %p2227_p7 = scmp.lt.s32.totalorder %s2221_s18, %s2221_s18 }
 0x3cb   :  { %v1462_v6 = vsel %vm1448_vm11, %v1439_v47, %v1459_v5  ;;  %2104 = vmatpush3.msra.mxu1 %v1250_v42  ;;  %2105 = vmatprep.mubr.msk.f32.mxu1 %vm999_vm9, %v1254_v3 }
 0x3cc   :  { %2191 = vtanh.f32 %v1462_v6  ;;  %p2228_p8 = por %p2227_p7, %p2226_p6 }
 0x3ce   :  { %2106 = vmatmul.mubr.msk.f32.vlgmr.msra.gmra.mxu1 %vm999_vm9, %v1255_v7  ;;  %p2229_p9 = pnand %p2228_p8, %p2222_p5 }
 0x3cf   :  { %2119 = vmatprep.mubr.msk.f32.mxu1 %vm1339_vm1, %v1468_v8 }
 0x3d7   :  { %v2190_v9 = vpop.eup %2189 }
 0x3d8   :  { %v1467_v10 = vmul.f32 %v2190_v9, %v2114_v45 }
 0x3d9   :  { %v2192_v11 = vpop.eup %2191 }
 0x3da   :  { %2115 = vmatprep.subr.mxu1 %v1467_v10  ;;  %v1466_v12 = vmul.f32 %v2192_v11, %v1439_v47 }
 0x3db   :  { %2116 = vmatpush3.msra.mxu1 %v1467_v10 }
 0x3dc   :  { %2117 = vmatprep.subr.mxu1 %v1466_v12 }
 0x3dd   :  { %2118 = vmatpush3.msra.mxu1 %v1466_v12 }
 0x3de   :  { %2120 = vmatmul.mubr.msk.f32.vlgmr.msra.gmra.mxu1 %vm1339_vm1, %v1469_v13 }
 0x3df   :  { %2122 = vmatprep.mubr.msk.f32.mxu1 %vm1339_vm1, %v1470_v14 }
 0x3e2   :  { %2123 = vmatmul.mubr.msk.f32.gmra.mxu1 %vm1339_vm1, %v1471_v15 }
 0x482   :  { %v2907_v19 = vpop.f32.mrf.mxu1 }
 0x484   :  { %v2909_v20 = vpop.f32.mrf.mxu1 }
 0x48a   :  { %v2911_v21 = vpop.f32.mrf.mxu1 }
 0x48c   :  { %v2913_v22 = vpop.f32.mrf.mxu1 }
 0x48e   :  { %v2107_v23 = vpop.f32.mrf.mxu1 }
 0x490   :  { %v1328_v24 = vpop.f32.mrf.mxu1 }
 0x49e   :  { %v2121_v25 = vpop.f32.mrf.mxu1 }
 0x49f   :  { %v1570_v26 = vsub.f32 0.0, %v2121_v25 }
 0x4a0   :  { %v1550_v27 = vpop.f32.mrf.mxu1 }
 0x4a1   :  { %v1569_v28 = vsub.f32 0.0, %v1550_v27  ;;  %v1575_v32 = vmul.f32 1.442695, %v1570_v26 }
 0x4a2   :  { %v2124_v29 = vpop.f32.mrf.mxu1 }
 0x4a3   :  { %v1573_v30 = vmul.f32 1.442695, %v1569_v28  ;;  %v1572_v31 = vsub.f32 0.0, %v2124_v29 }
 0x4a4   :  { %v1560_v33 = vpop.f32.mrf.mxu1 }
 0x4a5   :  { %v1579_v34 = vmul.f32 1.442695, %v1572_v31  ;;  %v1571_v35 = vsub.f32 0.0, %v1560_v33  ;;  %2193 = vpow2.f32 %v1573_v30 }
 0x4a7   :  { %2195 = vpow2.f32 %v1579_v34  ;;  %v1577_v36 = vmul.f32 1.442695, %v1571_v35 }
 0x4a8   :  { %2197 = vpow2.f32 %v1575_v32 }
 0x4a9   :  { %2199 = vpow2.f32 %v1577_v36 }
 0x4b2   :  { %v2194_v37 = vpop.eup %2193 }
 0x4b3   :  { %v1581_v42 = vadd.f32 1.0, %v2194_v37 }
 0x4b4   :  { %v2196_v38 = vpop.eup %2195 }
 0x4b5   :  { %v2198_v39 = vpop.eup %2197  ;;  %v1584_v40 = vadd.f32 1.0, %v2196_v38 }
 0x4b6   :  { %v2200_v41 = vpop.eup %2199  ;;  %v1582_v44 = vadd.f32 1.0, %v2198_v39 }
 0x4b7   :  { %2201 = vrcp.f32 %v1584_v40  ;;  %v1583_v43 = vadd.f32 1.0, %v2200_v41 }
 0x4b9   :  { %2203 = vrcp.f32 %v1583_v43 }
 0x4ba   :  { %2205 = vrcp.f32 %v1581_v42 }
 0x4bb   :  { %2207 = vrcp.f32 %v1582_v44 }
 0x4c4   :  { %v2202_v45 = vpop.eup %2201 }
 0x4c5   :  { %1616 = vperm.xlu0 %2147, %v2202_v45  }
 0x4c6   :  { %v2204_v46 = vpop.eup %2203 }
 0x4c7   :  { %1611 = vperm.xlu1 %2148, %v2204_v46   ;;  %v2206_v47 = vpop.eup %2205 }
 0x4c8   :  { %v2208_v48 = vpop.eup %2207 }
 0x4c9   :  { %1601 = vperm.xlu0 %2147, %v2206_v47  }
 0x4cb   :  { %1606 = vperm.xlu1 %2148, %v2208_v48  }
 0x4cd   :  { %1710 = vrot.lane.b32.xlu0 %v1705_v49, %s2252_s28 }
 0x4cf   :  { %1708 = vrot.lane.b32.xlu1 %v1704_v51, %s2252_s28 }
 0x4d1   :  { %1718 = vrot.lane.b32.xlu0 %v2107_v23, %s2248_s29 }
 0x4d3   :  { %1716 = vrot.lane.b32.xlu1 %v1328_v24, %s2248_s29 }
 0x540   :  { %v1617_v53 = vpop.permute.xlu0 %1616 }
 0x541   :  { %v1622_v17 = vmul.f32 %v1617_v53, %v1598_v52 }
 0x542   :  { %v1612_v16 = vpop.permute.xlu1 %1611 }
 0x543   :  { %v1621_v55 = vmul.f32 %v1612_v16, %v1597_v54  ;;  %2125 = vmatprep.subr.mxu0 %v1622_v17 }
 0x544   :  { %2126 = vmatpush3.msra.mxu0 %v1622_v17  ;;  %v1602_v58 = vpop.permute.xlu0 %1601 }
 0x545   :  { %2127 = vmatprep.subr.mxu0 %v1621_v55  ;;  %v1619_v61 = vmul.f32 %v1602_v58, %v1595_v57 }
 0x546   :  { %2128 = vmatpush3.msra.mxu0 %v1621_v55  ;;  %v1607_v59 = vpop.permute.xlu1 %1606 }
 0x547   :  { %v1620_v60 = vmul.f32 %v1607_v59, %v1596_v56 }
 0x548   :  { %v1711_v63 = vpop.permute.xlu0 %1710 }
 0x549   :  { %2129 = vmatprep.subr.mxu0 %v1620_v60  ;;  %v1723_v2 = vsel %vm722_vm7, %v2911_v21, %v1711_v63 }
 0x54a   :  { %2130 = vmatpush3.msra.mxu0 %v1620_v60  ;;  %v1709_v0 = vpop.permute.xlu1 %1708 }
 0x54b   :  { %2131 = vmatprep.subr.mxu0 %v1619_v61  ;;  %v1722_v5 = vsel %vm722_vm7, %v2913_v22, %v1709_v0 }
 0x54c   :  { %2132 = vmatpush3.msra.mxu0 %v1619_v61  ;;  %v1719_v1 = vpop.permute.xlu0 %1718 }
 0x54d   :  { %2134 = vmatmul.mubr.msk.f32.vlgmr.msra.gmra.mxu0 %vm722_vm7, %v1594_v62  ;;  %v1725_v4 = vsel %vm604_vm6, %v1723_v2, %v1719_v1 }
 0x54e   :  { %v1717_v3 = vpop.permute.xlu1 %1716  ;;  %v1727_v7 = vmul.f32 %v2907_v19, %v1725_v4 }
 0x54f   :  { %v1724_v6 = vsel %vm604_vm6, %v1722_v5, %v1717_v3 }
 0x550   :  { %v1726_v10 = vmul.f32 %v1724_v6, %v2909_v20 }
 0x60d   :  { %v2135_v8 = vpop.f32.mrf.mxu0 }
 0x60e   :  { %v1729_v9 = vmul.f32 %v2135_v8, %v1727_v7 }
 0x60f   :  { %v1695_v11 = vpop.f32.mrf.mxu0 }
 0x610   :  { %1731 = vst [vmem:[#allocation5 + $0x8] sm:$0xff] %v1729_v9  ;;  %v1728_v12 = vmul.f32 %v1726_v10, %v1695_v11 }
 0x612   :  { %1730 = vst [vmem:[#allocation5] sm:$0xff] %v1728_v12 }
 0x613   :  { %2232 = shalt.err (!%p2229_p9)
}
 0x614   :  { %s2254_s7 = smov 128   ;;  %s2255_s19 = smov 8  }
 0x615   :  { %1743 = dma.vmem_to_hbm [thread:$0]  %s1738_s14, 256, %s2970_s16, [#allocation3], %s2254_s7, %s2254_s7, %s2255_s19  }
 0x616   :  { %2243 = dma.done.wait [#allocation3], 256  }
 0x617   :  { %2244 = vsyncadd [#allocation3], 4294967040 }
 0x618   :  { %1747 = vsyncpa [#allocation3], 1 }
 0x619   :  { %1748 = vsyncpa [#allocation4], 1 }

</bundles_post_ra>
